<compile_context>
chip_gen: v7x
topology: tpu7x:2x2x1
jax: 0.10.0
libtpu: 0.0.40
codegen_flags: <defaults>
</compile_context>

<pallas_src>
import numpy as np
import jax
import jax.numpy as jnp
from jax.experimental import pallas as pl
from jax.experimental.pallas import tpu as pltpu

_BN_EPS = 1e-5


# -----------------------------------------------------------------------------
# fused Pallas kernel
# -----------------------------------------------------------------------------
def _make_fused_kernel(Hp, Wp, H2, W2, oh, ow, C1, C2, C_out):
    """conv1+bn1+relu -> conv2+bn2+relu -> adaptive avg pool -> conv3+bn3+sigmoid.

    Refs (batch dim squeezed by BlockSpec):
      p1_ref: (4*Hp*Wp, 9*C_in) bf16   conv1 im2col patches in polyphase order
      w1_ref: (9*C_in, 128)     bf16   folded conv1+bn1 weights
      b1_ref: (1, 128)          f32
      w2_ref: (9*128, 64)       bf16   folded conv2+bn2 weights
      b2_ref: (1, 64)           f32
      pm_ref: ((oh+2)*(ow+2), H2*W2) f32  pool matrix with conv3 zero-pad folded in
      w3_ref: (9*64, out_ch)    bf16   folded conv3+bn3 weights
      b3_ref: (1, out_ch)       f32
      o_ref : (oh*ow, out_ch)   f32
    """
    M1 = 4 * Hp * Wp
    M2 = H2 * W2
    M3 = oh * ow

    def kernel(p1_ref, w1_ref, b1_ref, w2_ref, b2_ref, pm_ref,
               w3_ref, b3_ref, o_ref):
        # ---- conv1 + bn1 + relu : one im2col matmul, K = 9*in_planes --------
        y1 = jnp.dot(p1_ref[...], w1_ref[...],
                     preferred_element_type=jnp.float32)          # (M1, 128)
        y1 = jnp.maximum(y1 + b1_ref[...], 0.0).astype(jnp.bfloat16)
        # Wp % 8 == 0, so this reshape is a tile-aligned (free) view.
        y1 = y1.reshape(4, Hp, Wp, C1)                            # polyphase slabs

        # ---- conv2 + bn2 + relu : lane-concat im2col, single K=1152 matmul --
        cols2 = []
        for kh in range(3):
            for kw in range(3):
                ph = 2 * (kh % 2) + (kw % 2)
                dh, dw = kh // 2, kw // 2
                cols2.append(y1[ph, dh:dh + H2, dw:dw + W2, :].reshape(M2, C1))
        cols2 = jnp.concatenate(cols2, axis=-1)                   # (M2, 9*128)
        y2 = jnp.dot(cols2, w2_ref[...], preferred_element_type=jnp.float32)
        y2 = jnp.maximum(y2 + b2_ref[...], 0.0)                   # (M2, 64) f32

        # ---- adaptive avg pool (+ conv3 zero-pad) : one matmul --------------
        pooled = jnp.dot(pm_ref[...], y2,
                         preferred_element_type=jnp.float32)      # ((oh+2)*(ow+2), 64)
        pooled = pooled.astype(jnp.bfloat16).reshape(oh + 2, ow + 2, C2)

        # ---- conv3 + bn3 + sigmoid : single K=576 matmul ---------------------
        cols3 = []
        for kh in range(3):
            for kw in range(3):
                cols3.append(pooled[kh:kh + oh, kw:kw + ow, :].reshape(M3, C2))
        cols3 = jnp.concatenate(cols3, axis=-1)                   # (M3, 9*64)
        y3 = jnp.dot(cols3, w3_ref[...], preferred_element_type=jnp.float32)
        o_ref[...] = jax.nn.sigmoid(y3 + b3_ref[...]).astype(o_ref.dtype)

    return kernel


# -----------------------------------------------------------------------------
# wrapper glue
# -----------------------------------------------------------------------------
def _fold_conv_bn(w, b, gamma, beta, mean, var):
    """PyTorch (C_out,C_in,3,3) conv + eval BN -> (9*C_in,C_out) bf16 W, (1,C_out) f32 b."""
    c_out, c_in = w.shape[0], w.shape[1]
    scale = gamma / jnp.sqrt(var + _BN_EPS)
    wk = (jnp.transpose(w, (2, 3, 1, 0)).reshape(9 * c_in, c_out)
          * scale[None, :]).astype(jnp.bfloat16)
    bk = ((b - mean) * scale + beta).reshape(1, c_out).astype(jnp.float32)
    return wk, bk


def _adaptive_pool_matrix(in_size, out_size):
    """(out_size, in_size) averaging matrix matching AdaptiveAvgPool bin rules."""
    P = np.zeros((out_size, in_size), np.float32)
    for i in range(out_size):
        s = (i * in_size) // out_size
        e = -((-(i + 1) * in_size) // out_size)          # ceil
        P[i, s:e] = 1.0 / (e - s)
    return P


def _pool_matrix_with_pad(H2, W2, oh, ow):
    """Kron pooling matrix, extended so the result already carries conv3's 1-px zero pad."""
    core = np.kron(_adaptive_pool_matrix(H2, oh), _adaptive_pool_matrix(W2, ow))
    pm = np.zeros(((oh + 2) * (ow + 2), H2 * W2), np.float32)
    for i in range(oh):
        for j in range(ow):
            pm[(i + 1) * (ow + 2) + (j + 1), :] = core[i * ow + j, :]
    return jnp.asarray(pm)


def _conv1_phase_patches(x_nhwc, H1, W1, Hp, Wp):
    """conv1 im2col patches reordered into 4 stride-2 phases: (N, 4*Hp*Wp, 9*C_in) bf16.

    Cheap wrapper-side XLA work (input has only in_planes channels); avoids any
    strided access and any HBM round trip over the 128-channel conv1 output.
    """
    N, H, W, C = x_nhwc.shape
    cols = [x_nhwc[:, kh:kh + 2 * H1 - 1:2, kw:kw + 2 * W1 - 1:2, :]
            for kh in range(3) for kw in range(3)]
    patches = jnp.concatenate(cols, axis=-1)                       # (N, H1, W1, 9C)
    padded = jnp.pad(patches,
                     ((0, 0), (0, 2 * Hp - H1), (0, 2 * Wp - W1), (0, 0)))
    phases = jnp.stack([padded[:, p::2, q::2, :]
                        for p in (0, 1) for q in (0, 1)], axis=1)  # (N,4,Hp,Wp,9C)
    return phases.reshape(N, 4 * Hp * Wp, 9 * C).astype(jnp.bfloat16)


def flow_guided_gate_forward(x, params, out_size):
    """x: (N, in_planes, H, W) f32 NCHW -> (N, out_ch, out_size[0], out_size[1])."""
    N, _, H, W = x.shape
    oh, ow = int(out_size[0]), int(out_size[1])

    H1, W1 = (H - 3) // 2 + 1, (W - 3) // 2 + 1
    H2, W2 = (H1 - 3) // 2 + 1, (W1 - 3) // 2 + 1
    Hp = H2 + 1
    Wp = -(-(W2 + 1) // 8) * 8      # pad slab width to 8 -> tile-aligned in-kernel reshape

    w1, b1 = _fold_conv_bn(params["conv1_w"], params["conv1_b"],
                           params["bn1_gamma"], params["bn1_beta"],
                           params["bn1_mean"], params["bn1_var"])
    w2, b2 = _fold_conv_bn(params["conv2_w"], params["conv2_b"],
                           params["bn2_gamma"], params["bn2_beta"],
                           params["bn2_mean"], params["bn2_var"])
    w3, b3 = _fold_conv_bn(params["conv3_w"], params["conv3_b"],
                           params["bn3_gamma"], params["bn3_beta"],
                           params["bn3_mean"], params["bn3_var"])
    C1, C2, C_out = w1.shape[-1], w2.shape[-1], w3.shape[-1]

    x_nhwc = jnp.transpose(x, (0, 2, 3, 1))
    p1 = _conv1_phase_patches(x_nhwc, H1, W1, Hp, Wp)              # (N, M1, 9*C_in)
    pm = _pool_matrix_with_pad(H2, W2, oh, ow)                     # ((oh+2)*(ow+2), H2*W2)

    M1 = 4 * Hp * Wp
    M3 = oh * ow
    kernel = _make_fused_kernel(Hp, Wp, H2, W2, oh, ow, C1, C2, C_out)

    out = pl.pallas_call(
        kernel,
        out_shape=jax.ShapeDtypeStruct((N, M3, C_out), jnp.float32),
        grid=(N,),
        in_specs=[
            pl.BlockSpec((None, M1, p1.shape[-1]), lambda n: (n, 0, 0)),
            pl.BlockSpec(w1.shape, lambda n: (0, 0)),
            pl.BlockSpec(b1.shape, lambda n: (0, 0)),
            pl.BlockSpec(w2.shape, lambda n: (0, 0)),
            pl.BlockSpec(b2.shape, lambda n: (0, 0)),
            pl.BlockSpec(pm.shape, lambda n: (0, 0)),
            pl.BlockSpec(w3.shape, lambda n: (0, 0)),
            pl.BlockSpec(b3.shape, lambda n: (0, 0)),
        ],
        out_specs=pl.BlockSpec((None, M3, C_out), lambda n: (n, 0, 0)),
        compiler_params=pltpu.CompilerParams(
            dimension_semantics=("parallel",),
            vmem_limit_bytes=32 * 1024 * 1024),
    )(p1, w1, b1, w2, b2, pm, w3, b3)

    out = out.reshape(N, oh, ow, C_out)
    return jnp.transpose(out, (0, 3, 1, 2))


# -----------------------------------------------------------------------------
# independent numpy reference
# -----------------------------------------------------------------------------
def _np_conv2d(x, w, b, stride, pad):
    x = np.asarray(x, np.float64)
    w = np.asarray(w, np.float64)
    b = np.asarray(b, np.float64)
    if pad:
        x = np.pad(x, ((0, 0), (0, 0), (pad, pad), (pad, pad)))
    N, C_in, H, W = x.shape
    C_out, _, KH, KW = w.shape
    H_out = (H - KH) // stride + 1
    W_out = (W - KW) // stride + 1
    out = np.zeros((N, C_out, H_out, W_out))
    for kh in range(KH):
        for kw in range(KW):
            xs = x[:, :, kh:kh + stride * H_out:stride, kw:kw + stride * W_out:stride]
            out += np.einsum('nchw,oc->nohw', xs, w[:, :, kh, kw])
    return out + b.reshape(1, -1, 1, 1)


def _np_bn(x, gamma, beta, mean, var):
    g = np.asarray(gamma, np.float64).reshape(1, -1, 1, 1)
    b = np.asarray(beta, np.float64).reshape(1, -1, 1, 1)
    m = np.asarray(mean, np.float64).reshape(1, -1, 1, 1)
    v = np.asarray(var, np.float64).reshape(1, -1, 1, 1)
    return g * (x - m) / np.sqrt(v + _BN_EPS) + b


def _np_adaptive_avgpool(x, oh, ow):
    N, C, H, W = x.shape
    out = np.zeros((N, C, oh, ow))
    for i in range(oh):
        hs, he = (i * H) // oh, -((-(i + 1) * H) // oh)
        for j in range(ow):
            ws, we = (j * W) // ow, -((-(j + 1) * W) // ow)
            out[:, :, i, j] = x[:, :, hs:he, ws:we].mean(axis=(2, 3))
    return out


def reference_forward(x, p, out_size):
    r = _np_conv2d(x, p["conv1_w"], p["conv1_b"], 2, 0)
    r = np.maximum(_np_bn(r, p["bn1_gamma"], p["bn1_beta"], p["bn1_mean"], p["bn1_var"]), 0.0)
    r = _np_conv2d(r, p["conv2_w"], p["conv2_b"], 2, 0)
    r = np.maximum(_np_bn(r, p["bn2_gamma"], p["bn2_beta"], p["bn2_mean"], p["bn2_var"]), 0.0)
    r = _np_adaptive_avgpool(r, out_size[0], out_size[1])
    r = _np_conv2d(r, p["conv3_w"], p["conv3_b"], 1, 1)
    r = _np_bn(r, p["bn3_gamma"], p["bn3_beta"], p["bn3_mean"], p["bn3_var"])
    return 1.0 / (1.0 + np.exp(-r))


# -----------------------------------------------------------------------------
# test
# -----------------------------------------------------------------------------
if __name__ == "__main__":
    key = jax.random.PRNGKey(0)
    keys = jax.random.split(key, 8)

    N, in_planes, H, W = 2, 4, 21, 21
    out_ch, out_size = 8, (3, 3)

    def conv_init(k, c_out, c_in):
        kw_, kb_ = jax.random.split(k)
        s = 1.0 / np.sqrt(c_in * 9)
        w = s * jax.random.normal(kw_, (c_out, c_in, 3, 3), jnp.float32)
        b = s * jax.random.normal(kb_, (c_out,), jnp.float32)
        return w, b

    def bn_init(k, c):
        k1, k2, k3, k4 = jax.random.split(k, 4)
        gamma = 1.0 + 0.1 * jax.random.normal(k1, (c,), jnp.float32)
        beta = 0.1 * jax.random.normal(k2, (c,), jnp.float32)
        mean = 0.1 * jax.random.normal(k3, (c,), jnp.float32)
        var = jax.random.uniform(k4, (c,), jnp.float32, 0.5, 1.5)
        return gamma, beta, mean, var

    x = jax.random.normal(keys[0], (N, in_planes, H, W), jnp.float32)
    w1, b1 = conv_init(keys[1], 128, in_planes)
    w2, b2 = conv_init(keys[2], 64, 128)
    w3, b3 = conv_init(keys[3], out_ch, 64)
    g1, be1, m1, v1 = bn_init(keys[4], 128)
    g2, be2, m2, v2 = bn_init(keys[5], 64)
    g3, be3, m3, v3 = bn_init(keys[6], out_ch)

    params = dict(
        conv1_w=w1, conv1_b=b1, bn1_gamma=g1, bn1_beta=be1, bn1_mean=m1, bn1_var=v1,
        conv2_w=w2, conv2_b=b2, bn2_gamma=g2, bn2_beta=be2, bn2_mean=m2, bn2_var=v2,
        conv3_w=w3, conv3_b=b3, bn3_gamma=g3, bn3_beta=be3, bn3_mean=m3, bn3_var=v3)

    fwd = jax.jit(lambda xx, pp: flow_guided_gate_forward(xx, pp, out_size))
    out = jax.block_until_ready(fwd(x, params))

    ref = reference_forward(np.asarray(x),
                            {k: np.asarray(v) for k, v in params.items()},
                            out_size)
    assert out.shape == ref.shape == (N, out_ch, out_size[0], out_size[1]), (out.shape, ref.shape)
    if not np.allclose(np.asarray(out), ref, rtol=2e-2, atol=2e-2):
        raise AssertionError(
            f"mismatch, max abs diff = {np.max(np.abs(np.asarray(out) - ref))}")
    print("KERNEL_OK")
</pallas_src>

<mosaic_0001>
module attributes {stable_mosaic.version = 11 : i64} {
  func.func @kernel(%arg0: i32, %arg1: memref<1x160x36xbf16, #tpu.memory_space<vmem>>, %arg2: memref<36x128xbf16, #tpu.memory_space<vmem>>, %arg3: memref<1x128xf32, #tpu.memory_space<vmem>>, %arg4: memref<1152x64xbf16, #tpu.memory_space<vmem>>, %arg5: memref<1x64xf32, #tpu.memory_space<vmem>>, %arg6: memref<25x16xf32, #tpu.memory_space<vmem>>, %arg7: memref<576x8xbf16, #tpu.memory_space<vmem>>, %arg8: memref<1x8xf32, #tpu.memory_space<vmem>>, %arg9: memref<1x9x8xf32, #tpu.memory_space<vmem>>) attributes {dimension_semantics = [#tpu.dimension_semantics<parallel>], iteration_bounds = array<i64: 2>, scalar_prefetch = 0 : i64, scratch_operands = 0 : i64, tpu.core_type = #tpu.core_type<tc>, window_params = [{transform_indices = @transform_0, window_bounds = array<i64: 1, 160, 36>}, {pipeline_mode = #tpu.pipeline_mode<synchronous>, transform_indices = @transform_1, window_bounds = array<i64: 36, 128>}, {pipeline_mode = #tpu.pipeline_mode<synchronous>, transform_indices = @transform_2, window_bounds = array<i64: 1, 128>}, {pipeline_mode = #tpu.pipeline_mode<synchronous>, transform_indices = @transform_3, window_bounds = array<i64: 1152, 64>}, {pipeline_mode = #tpu.pipeline_mode<synchronous>, transform_indices = @transform_4, window_bounds = array<i64: 1, 64>}, {pipeline_mode = #tpu.pipeline_mode<synchronous>, transform_indices = @transform_5, window_bounds = array<i64: 25, 16>}, {pipeline_mode = #tpu.pipeline_mode<synchronous>, transform_indices = @transform_6, window_bounds = array<i64: 576, 8>}, {pipeline_mode = #tpu.pipeline_mode<synchronous>, transform_indices = @transform_7, window_bounds = array<i64: 1, 8>}, {transform_indices = @transform_8, window_bounds = array<i64: 1, 9, 8>}]} {
    %c0 = arith.constant 0 : index
    %c0_0 = arith.constant 0 : index
    %c0_1 = arith.constant 0 : index
    %0 = vector.load %arg1[%c0, %c0_0, %c0_1] : memref<1x160x36xbf16, #tpu.memory_space<vmem>>, vector<1x160x36xbf16>
    %1 = vector.shape_cast %0 : vector<1x160x36xbf16> to vector<160x36xbf16>
    %c0_2 = arith.constant 0 : index
    %c0_3 = arith.constant 0 : index
    %2 = vector.load %arg2[%c0_2, %c0_3] : memref<36x128xbf16, #tpu.memory_space<vmem>>, vector<36x128xbf16>
    %cst = arith.constant dense<0.000000e+00> : vector<160x128xf32>
    %3 = tpu.matmul %1, %2, %cst {dimension_numbers = #tpu.dot_dimension_numbers<[1], [0], [0], [1], [0, 0, 1, 1], [], []>} : vector<160x36xbf16>, vector<36x128xbf16>, vector<160x128xf32> -> vector<160x128xf32>
    %c0_4 = arith.constant 0 : index
    %c0_5 = arith.constant 0 : index
    %4 = vector.load %arg3[%c0_4, %c0_5] : memref<1x128xf32, #tpu.memory_space<vmem>>, vector<1x128xf32>
    %5 = vector.broadcast %4 : vector<1x128xf32> to vector<160x128xf32>
    %6 = arith.addf %3, %5 : vector<160x128xf32>
    %cst_6 = arith.constant 0.000000e+00 : f32
    %7 = vector.broadcast %cst_6 : f32 to vector<160x128xf32>
    %8 = arith.maximumf %6, %7 : vector<160x128xf32>
    %9 = arith.truncf %8 : vector<160x128xf32> to vector<160x128xbf16>
    %10 = vector.shape_cast %9 : vector<160x128xbf16> to vector<4x5x8x128xbf16>
    %11 = vector.extract_strided_slice %10 {offsets = [0, 0, 0, 0], sizes = [1, 4, 4, 128], strides = [1, 1, 1, 1]} : vector<4x5x8x128xbf16> to vector<1x4x4x128xbf16>
    %12 = vector.shape_cast %11 : vector<1x4x4x128xbf16> to vector<4x4x128xbf16>
    %13 = vector.shape_cast %12 : vector<4x4x128xbf16> to vector<16x128xbf16>
    %14 = vector.extract_strided_slice %10 {offsets = [1, 0, 0, 0], sizes = [1, 4, 4, 128], strides = [1, 1, 1, 1]} : vector<4x5x8x128xbf16> to vector<1x4x4x128xbf16>
    %15 = vector.shape_cast %14 : vector<1x4x4x128xbf16> to vector<4x4x128xbf16>
    %16 = vector.shape_cast %15 : vector<4x4x128xbf16> to vector<16x128xbf16>
    %17 = vector.extract_strided_slice %10 {offsets = [0, 0, 1, 0], sizes = [1, 4, 4, 128], strides = [1, 1, 1, 1]} : vector<4x5x8x128xbf16> to vector<1x4x4x128xbf16>
    %18 = vector.shape_cast %17 : vector<1x4x4x128xbf16> to vector<4x4x128xbf16>
    %19 = vector.shape_cast %18 : vector<4x4x128xbf16> to vector<16x128xbf16>
    %20 = vector.extract_strided_slice %10 {offsets = [2, 0, 0, 0], sizes = [1, 4, 4, 128], strides = [1, 1, 1, 1]} : vector<4x5x8x128xbf16> to vector<1x4x4x128xbf16>
    %21 = vector.shape_cast %20 : vector<1x4x4x128xbf16> to vector<4x4x128xbf16>
    %22 = vector.shape_cast %21 : vector<4x4x128xbf16> to vector<16x128xbf16>
    %23 = vector.extract_strided_slice %10 {offsets = [3, 0, 0, 0], sizes = [1, 4, 4, 128], strides = [1, 1, 1, 1]} : vector<4x5x8x128xbf16> to vector<1x4x4x128xbf16>
    %24 = vector.shape_cast %23 : vector<1x4x4x128xbf16> to vector<4x4x128xbf16>
    %25 = vector.shape_cast %24 : vector<4x4x128xbf16> to vector<16x128xbf16>
    %26 = vector.extract_strided_slice %10 {offsets = [2, 0, 1, 0], sizes = [1, 4, 4, 128], strides = [1, 1, 1, 1]} : vector<4x5x8x128xbf16> to vector<1x4x4x128xbf16>
    %27 = vector.shape_cast %26 : vector<1x4x4x128xbf16> to vector<4x4x128xbf16>
    %28 = vector.shape_cast %27 : vector<4x4x128xbf16> to vector<16x128xbf16>
    %29 = vector.extract_strided_slice %10 {offsets = [0, 1, 0, 0], sizes = [1, 4, 4, 128], strides = [1, 1, 1, 1]} : vector<4x5x8x128xbf16> to vector<1x4x4x128xbf16>
    %30 = vector.shape_cast %29 : vector<1x4x4x128xbf16> to vector<4x4x128xbf16>
    %31 = vector.shape_cast %30 : vector<4x4x128xbf16> to vector<16x128xbf16>
    %32 = vector.extract_strided_slice %10 {offsets = [1, 1, 0, 0], sizes = [1, 4, 4, 128], strides = [1, 1, 1, 1]} : vector<4x5x8x128xbf16> to vector<1x4x4x128xbf16>
    %33 = vector.shape_cast %32 : vector<1x4x4x128xbf16> to vector<4x4x128xbf16>
    %34 = vector.shape_cast %33 : vector<4x4x128xbf16> to vector<16x128xbf16>
    %35 = vector.extract_strided_slice %10 {offsets = [0, 1, 1, 0], sizes = [1, 4, 4, 128], strides = [1, 1, 1, 1]} : vector<4x5x8x128xbf16> to vector<1x4x4x128xbf16>
    %36 = vector.shape_cast %35 : vector<1x4x4x128xbf16> to vector<4x4x128xbf16>
    %37 = vector.shape_cast %36 : vector<4x4x128xbf16> to vector<16x128xbf16>
    %38 = tpu.concatenate %13, %16, %19, %22, %25, %28, %31, %34, %37 in 1 : vector<16x128xbf16>, vector<16x128xbf16>, vector<16x128xbf16>, vector<16x128xbf16>, vector<16x128xbf16>, vector<16x128xbf16>, vector<16x128xbf16>, vector<16x128xbf16>, vector<16x128xbf16> -> vector<16x1152xbf16>
    %c0_7 = arith.constant 0 : index
    %c0_8 = arith.constant 0 : index
    %39 = vector.load %arg4[%c0_7, %c0_8] : memref<1152x64xbf16, #tpu.memory_space<vmem>>, vector<1152x64xbf16>
    %cst_9 = arith.constant dense<0.000000e+00> : vector<16x64xf32>
    %40 = tpu.matmul %38, %39, %cst_9 {dimension_numbers = #tpu.dot_dimension_numbers<[1], [0], [0], [1], [0, 0, 1, 1], [], []>} : vector<16x1152xbf16>, vector<1152x64xbf16>, vector<16x64xf32> -> vector<16x64xf32>
    %c0_10 = arith.constant 0 : index
    %c0_11 = arith.constant 0 : index
    %41 = vector.load %arg5[%c0_10, %c0_11] : memref<1x64xf32, #tpu.memory_space<vmem>>, vector<1x64xf32>
    %42 = vector.broadcast %41 : vector<1x64xf32> to vector<16x64xf32>
    %43 = arith.addf %40, %42 : vector<16x64xf32>
    %cst_12 = arith.constant 0.000000e+00 : f32
    %44 = vector.broadcast %cst_12 : f32 to vector<16x64xf32>
    %45 = arith.maximumf %43, %44 : vector<16x64xf32>
    %c0_13 = arith.constant 0 : index
    %c0_14 = arith.constant 0 : index
    %46 = vector.load %arg6[%c0_13, %c0_14] : memref<25x16xf32, #tpu.memory_space<vmem>>, vector<25x16xf32>
    %cst_15 = arith.constant dense<0.000000e+00> : vector<25x64xf32>
    %47 = tpu.matmul %46, %45, %cst_15 {dimension_numbers = #tpu.dot_dimension_numbers<[1], [0], [0], [1], [0, 0, 1, 1], [], []>} : vector<25x16xf32>, vector<16x64xf32>, vector<25x64xf32> -> vector<25x64xf32>
    %48 = arith.truncf %47 : vector<25x64xf32> to vector<25x64xbf16>
    %49 = vector.shape_cast %48 : vector<25x64xbf16> to vector<5x5x64xbf16>
    %50 = vector.extract_strided_slice %49 {offsets = [0, 0, 0], sizes = [3, 3, 64], strides = [1, 1, 1]} : vector<5x5x64xbf16> to vector<3x3x64xbf16>
    %51 = vector.shape_cast %50 : vector<3x3x64xbf16> to vector<9x64xbf16>
    %52 = vector.extract_strided_slice %49 {offsets = [0, 1, 0], sizes = [3, 3, 64], strides = [1, 1, 1]} : vector<5x5x64xbf16> to vector<3x3x64xbf16>
    %53 = vector.shape_cast %52 : vector<3x3x64xbf16> to vector<9x64xbf16>
    %54 = vector.extract_strided_slice %49 {offsets = [0, 2, 0], sizes = [3, 3, 64], strides = [1, 1, 1]} : vector<5x5x64xbf16> to vector<3x3x64xbf16>
    %55 = vector.shape_cast %54 : vector<3x3x64xbf16> to vector<9x64xbf16>
    %56 = vector.extract_strided_slice %49 {offsets = [1, 0, 0], sizes = [3, 3, 64], strides = [1, 1, 1]} : vector<5x5x64xbf16> to vector<3x3x64xbf16>
    %57 = vector.shape_cast %56 : vector<3x3x64xbf16> to vector<9x64xbf16>
    %58 = vector.extract_strided_slice %49 {offsets = [1, 1, 0], sizes = [3, 3, 64], strides = [1, 1, 1]} : vector<5x5x64xbf16> to vector<3x3x64xbf16>
    %59 = vector.shape_cast %58 : vector<3x3x64xbf16> to vector<9x64xbf16>
    %60 = vector.extract_strided_slice %49 {offsets = [1, 2, 0], sizes = [3, 3, 64], strides = [1, 1, 1]} : vector<5x5x64xbf16> to vector<3x3x64xbf16>
    %61 = vector.shape_cast %60 : vector<3x3x64xbf16> to vector<9x64xbf16>
    %62 = vector.extract_strided_slice %49 {offsets = [2, 0, 0], sizes = [3, 3, 64], strides = [1, 1, 1]} : vector<5x5x64xbf16> to vector<3x3x64xbf16>
    %63 = vector.shape_cast %62 : vector<3x3x64xbf16> to vector<9x64xbf16>
    %64 = vector.extract_strided_slice %49 {offsets = [2, 1, 0], sizes = [3, 3, 64], strides = [1, 1, 1]} : vector<5x5x64xbf16> to vector<3x3x64xbf16>
    %65 = vector.shape_cast %64 : vector<3x3x64xbf16> to vector<9x64xbf16>
    %66 = vector.extract_strided_slice %49 {offsets = [2, 2, 0], sizes = [3, 3, 64], strides = [1, 1, 1]} : vector<5x5x64xbf16> to vector<3x3x64xbf16>
    %67 = vector.shape_cast %66 : vector<3x3x64xbf16> to vector<9x64xbf16>
    %68 = tpu.concatenate %51, %53, %55, %57, %59, %61, %63, %65, %67 in 1 : vector<9x64xbf16>, vector<9x64xbf16>, vector<9x64xbf16>, vector<9x64xbf16>, vector<9x64xbf16>, vector<9x64xbf16>, vector<9x64xbf16>, vector<9x64xbf16>, vector<9x64xbf16> -> vector<9x576xbf16>
    %c0_16 = arith.constant 0 : index
    %c0_17 = arith.constant 0 : index
    %69 = vector.load %arg7[%c0_16, %c0_17] : memref<576x8xbf16, #tpu.memory_space<vmem>>, vector<576x8xbf16>
    %cst_18 = arith.constant dense<0.000000e+00> : vector<9x8xf32>
    %70 = tpu.matmul %68, %69, %cst_18 {dimension_numbers = #tpu.dot_dimension_numbers<[1], [0], [0], [1], [0, 0, 1, 1], [], []>} : vector<9x576xbf16>, vector<576x8xbf16>, vector<9x8xf32> -> vector<9x8xf32>
    %c0_19 = arith.constant 0 : index
    %c0_20 = arith.constant 0 : index
    %71 = vector.load %arg8[%c0_19, %c0_20] : memref<1x8xf32, #tpu.memory_space<vmem>>, vector<1x8xf32>
    %72 = vector.broadcast %71 : vector<1x8xf32> to vector<9x8xf32>
    %73 = arith.addf %70, %72 : vector<9x8xf32>
    %74 = arith.negf %73 : vector<9x8xf32>
    %75 = math.exp %74 : vector<9x8xf32>
    %cst_21 = arith.constant 1.000000e+00 : f32
    %76 = vector.broadcast %cst_21 : f32 to vector<9x8xf32>
    %77 = arith.addf %76, %75 : vector<9x8xf32>
    %78 = arith.divf %76, %77 : vector<9x8xf32>
    %c0_22 = arith.constant 0 : index
    %c0_23 = arith.constant 0 : index
    %c0_24 = arith.constant 0 : index
    %79 = vector.load %arg9[%c0_22, %c0_23, %c0_24] : memref<1x9x8xf32, #tpu.memory_space<vmem>>, vector<1x9x8xf32>
    %80 = vector.shape_cast %79 : vector<1x9x8xf32> to vector<9x8xf32>
    %81 = vector.shape_cast %78 : vector<9x8xf32> to vector<1x9x8xf32>
    tpu.vector_store %arg9[%c0_22, %c0_23, %c0_24], %81 {strides = array<i32>} : memref<1x9x8xf32, #tpu.memory_space<vmem>>, vector<1x9x8xf32>,
    return
  }
  func.func @transform_0(%arg0: i32) -> (i32, i32, i32) {
    %c0_i32 = arith.constant 0 : i32
    %c0_i32_0 = arith.constant 0 : i32
    %c0_i32_1 = arith.constant 0 : i32
    return %arg0, %c0_i32, %c0_i32_0 : i32, i32, i32
  }
  func.func @transform_1(%arg0: i32) -> (i32, i32) {
    %c0_i32 = arith.constant 0 : i32
    %c0_i32_0 = arith.constant 0 : i32
    %c0_i32_1 = arith.constant 0 : i32
    return %c0_i32, %c0_i32_0 : i32, i32
  }
  func.func @transform_2(%arg0: i32) -> (i32, i32) {
    %c0_i32 = arith.constant 0 : i32
    %c0_i32_0 = arith.constant 0 : i32
    %c0_i32_1 = arith.constant 0 : i32
    return %c0_i32, %c0_i32_0 : i32, i32
  }
  func.func @transform_3(%arg0: i32) -> (i32, i32) {
    %c0_i32 = arith.constant 0 : i32
    %c0_i32_0 = arith.constant 0 : i32
    %c0_i32_1 = arith.constant 0 : i32
    return %c0_i32, %c0_i32_0 : i32, i32
  }
  func.func @transform_4(%arg0: i32) -> (i32, i32) {
    %c0_i32 = arith.constant 0 : i32
    %c0_i32_0 = arith.constant 0 : i32
    %c0_i32_1 = arith.constant 0 : i32
    return %c0_i32, %c0_i32_0 : i32, i32
  }
  func.func @transform_5(%arg0: i32) -> (i32, i32) {
    %c0_i32 = arith.constant 0 : i32
    %c0_i32_0 = arith.constant 0 : i32
    %c0_i32_1 = arith.constant 0 : i32
    return %c0_i32, %c0_i32_0 : i32, i32
  }
  func.func @transform_6(%arg0: i32) -> (i32, i32) {
    %c0_i32 = arith.constant 0 : i32
    %c0_i32_0 = arith.constant 0 : i32
    %c0_i32_1 = arith.constant 0 : i32
    return %c0_i32, %c0_i32_0 : i32, i32
  }
  func.func @transform_7(%arg0: i32) -> (i32, i32) {
    %c0_i32 = arith.constant 0 : i32
    %c0_i32_0 = arith.constant 0 : i32
    %c0_i32_1 = arith.constant 0 : i32
    return %c0_i32, %c0_i32_0 : i32, i32
  }
  func.func @transform_8(%arg0: i32) -> (i32, i32, i32) {
    %c0_i32 = arith.constant 0 : i32
    %c0_i32_0 = arith.constant 0 : i32
    %c0_i32_1 = arith.constant 0 : i32
    return %arg0, %c0_i32, %c0_i32_0 : i32, i32, i32
  }
}

</mosaic_0001>

<bundles_post_ra>
// kernel: _lambda_.1
= control target key start
LH: loop header
LB: loop body
LE: loop exit
PB: predicated region body
PF: predicated region fallthrough
CT: control target
= control target key end

     0   :  { %s3566_s27 = smov 0   ;;  %s4333_s0 = inlined_call_operand.vmem [shape: bf16[2,160,36], index: 0, kind: input, shape index: {}]   ;;  %s4334_s1 = inlined_call_operand.vmem [shape: bf16[36,128], index: 1, kind: input, shape index: {}]   ;;  %s4335_s2 = inlined_call_operand.vmem [shape: f32[1,128], index: 2, kind: input, shape index: {}]   ;;  %s4336_s3 = inlined_call_operand.vmem [shape: bf16[1152,64], index: 3, kind: input, shape index: {}]   ;;  %s4337_s4 = inlined_call_operand.vmem [shape: f32[1,64], index: 4, kind: input, shape index: {}]   ;;  %s4338_s5 = inlined_call_operand.vmem [shape: f32[25,16], index: 5, kind: input, shape index: {}]   ;;  %s4339_s6 = inlined_call_operand.vmem [shape: bf16[576,8], index: 6, kind: input, shape index: {}]   ;;  %s4340_s7 = inlined_call_operand.vmem [shape: f32[1,8], index: 7, kind: input, shape index: {}]   ;;  %s4341_s8 = inlined_call_operand.vmem [shape: f32[2,9,8], index: 8, kind: output, shape index: {}]  }
   0x1 LB: > { %s2908_s28 = sadd.s32 4294967295, %s3514_s27   ;;  %p2912_p0 = scmp.ge.s32.totalorder %s3514_s27, 1  ;;  %s3514_s27 = sphi %s3566_s27, %s18_s27  }
   0x2   : > { %p262_p1 = scmp.lt.s32.totalorder %s3514_s27, 3 }
   0x4   : > { %p263_p2 = pnand %p2912_p0, %p262_p1 }
   0x5   : > { %v3379_v0 = vld [vmem:[%s4334_s1] sm:$0xff] (!%p263_p2)   ;;  %v3380_v1 = vld [vmem:[%s4334_s1 + $0x8] sm:$0xff] (!%p263_p2)   ;;  %p296_p3 = scmp.lt.s32.totalorder (!%p263_p2), %s2908_s28, 1  ;;  %v3381_v2 = vld [vmem:[%s4334_s1 + $0x10] ss:$0 sps:$4 sm:$0x33] (!%p263_p2)   ;;  %v631_v50 = vlaneseq (!%p263_p2) }
   0x6   : > { %266 = sbr.rel (%p263_p2) target bundleno = 1178 (0x49a), region = 52  ;;  %3292 = vmatprep.subr.bf16.mxu0 (!%p263_p2), %v3379_v0  ;;  %v3392_v3 = vld [vmem:[%s4336_s3 + $0x40] sm:$0xff] (!%p263_p2)   ;;  %vm435_vm0 = vcmask (!%p263_p2), 1041408   ;;  %vm404_vm1 = vcmask (!%p263_p2), 293888   ;;  %v3394_v16 = vld [vmem:[%s4336_s3 + $0x48] sm:$0xff] (!%p263_p2)   ;;  %v3396_v18 = vld [vmem:[%s4336_s3 + $0x50] sm:$0xff] (!%p263_p2)  }
   0x7   : > { %3293 = vmatpush3.bf16.msra.mxu0 (!%p263_p2), %v3379_v0  ;;  %v3393_v4 = vld [vmem:[%s4336_s3] sm:$0xff] (!%p263_p2)   ;;  %3140 = vmatprep.subr.bf16.mxu1 (!%p263_p2), %v3392_v3  ;;  %v437_v5 = vsel (!%p263_p2), %vm435_vm0, %v3381_v2, 0  ;;  %v3395_v17 = vld [vmem:[%s4336_s3 + $0x8] sm:$0xff] (!%p263_p2)   ;;  %v3397_v19 = vld [vmem:[%s4336_s3 + $0x10] sm:$0xff] (!%p263_p2)   ;;  %v3516_v48 = vmov (!%p263_p2), 1983009808  }
   0x8   : > { %3294 = vmatprep.subr.bf16.mxu0 (!%p263_p2), %v3380_v1  ;;  %3141 = vmatpush3.bf16.msra.mxu1 (!%p263_p2), %v3393_v4  ;;  %v3398_v20 = vld [vmem:[%s4336_s3 + $0xc0] sm:$0xff] (!%p263_p2)   ;;  %v3400_v22 = vld [vmem:[%s4336_s3 + $0x58] sm:$0xff] (!%p263_p2)   ;;  %v3402_v24 = vld [vmem:[%s4336_s3 + $0xc8] sm:$0xff] (!%p263_p2)   ;;  %v629_v49 = vunpack.c.l.s4 (!%p263_p2), %v3516_v48  ;;  %v3706_v53 = vshrl.u32 (!%p263_p2), %v631_v50, 7  ;;  %vm660_vm2 = vsmask.f32 (!%p263_p2), 1280 }
   0x9   : > { %3142 = vmatprep.subr.bf16.mxu1 (!%p263_p2), %v3394_v16  ;;  %v3399_v21 = vld [vmem:[%s4336_s3 + $0x80] sm:$0xff] (!%p263_p2)   ;;  %v3401_v23 = vld [vmem:[%s4336_s3 + $0x18] sm:$0xff] (!%p263_p2)   ;;  %v3403_v25 = vld [vmem:[%s4336_s3 + $0x88] sm:$0xff] (!%p263_p2)   ;;  %vm661_vm3 = vsmask.f32 (!%p263_p2), 3336  ;;  %vm3518_vm9 = vmmov (!%p263_p2), 0  }
   0xa   : > { %v3404_v26 = vld [vmem:[%s4336_s3 + $0x60] sm:$0xff] (!%p263_p2)   ;;  %v3406_v28 = vld [vmem:[%s4336_s3 + $0xd0] sm:$0xff] (!%p263_p2)   ;;  %v3408_v30 = vld [vmem:[%s4336_s3 + $0x68] sm:$0xff] (!%p263_p2)   ;;  %v630_v52 = vunpack.c.0.s8 (!%p263_p2), %v629_v49  ;;  %vm663_vm4 = vsmask.f32 (!%p263_p2), 5392  ;;  %vm1789_vm10 = vcmask (!%p263_p2), 130048  }
   0xb   : > { %3295 = vmatpush3.bf16.msra.mxu0 (!%p263_p2), %v3380_v1  ;;  %v3405_v27 = vld [vmem:[%s4336_s3 + $0x20] sm:$0xff] (!%p263_p2)   ;;  %v3407_v29 = vld [vmem:[%s4336_s3 + $0x90] sm:$0xff] (!%p263_p2)   ;;  %v3409_v31 = vld [vmem:[%s4336_s3 + $0x28] sm:$0xff] (!%p263_p2)   ;;  %vm665_vm5 = vsmask.f32 (!%p263_p2), 7448  ;;  %vm2399_vm11 = vcmask (!%p263_p2), 523264  }
   0xc   : > { %3364 = vmatprep.subr.msk.bf16.mxu0 (!%p263_p2), %vm435_vm0, %v3381_v2  ;;  %3143 = vmatpush3.bf16.msra.mxu1 (!%p263_p2), %v3395_v17  ;;  %v3410_v32 = vld [vmem:[%s4336_s3 + $0xd8] sm:$0xff] (!%p263_p2)   ;;  %v3412_v34 = vld [vmem:[%s4336_s3 + $0x70] sm:$0xff] (!%p263_p2)   ;;  %v3414_v36 = vld [vmem:[%s4336_s3 + $0xe0] sm:$0xff] (!%p263_p2)   ;;  %v3713_v60 = vsub.s32 (!%p263_p2), %v630_v52, %v3706_v53  ;;  %vm2849_vm12 = vcmask (!%p263_p2), 64512   ;;  %vm2851_vm13 = vcmask (!%p263_p2), 57344  }
   0xd   : > { %s4345_s28 = smov (!%p296_p3, %s2908_s28), 1  ;;  %3144 = vmatprep.subr.bf16.mxu1 %v3396_v18  ;;  %v3411_v33 = vld [vmem:[%s4336_s3 + $0x98] sm:$0xff]   ;;  %v3413_v35 = vld [vmem:[%s4336_s3 + $0x30] sm:$0xff]   ;;  %v3415_v37 = vld [vmem:[%s4336_s3 + $0xa0] sm:$0xff]  }
   0xe   : > { %s3365_s17 = smul.u32 80, %s4345_s28  ;;  %v3416_v38 = vld [vmem:[%s4336_s3 + $0x78] sm:$0xff]   ;;  %v3418_v40 = vld [vmem:[%s4336_s3 + $0xe8] sm:$0xff]   ;;  %v3420_v42 = vld [vmem:[%s4336_s3 + $0x140] sm:$0xff]   ;;  %s3102_s30 = sshll.u32 %s4345_s28, 4 }
   0xf   : > { %3297 = vmatpush3.bf16.msra.mxu0 %v437_v5  ;;  %v3417_v39 = vld [vmem:[%s4336_s3 + $0x38] sm:$0xff]   ;;  %v3419_v41 = vld [vmem:[%s4336_s3 + $0xa8] sm:$0xff]   ;;  %v3422_v43 = vld [vmem:[%s4336_s3 + $0xf0] sm:$0xff]   ;;  %s305_s11 = scalar_lea.vmem %s4341_s8, %s3102_s30 }
  0x10   : > { %s300_s20 = scalar_lea.vmem %s4333_s0, %s3365_s17  ;;  %3145 = vmatpush3.bf16.msra.mxu1 %v3397_v19  ;;  %3162 = vmatprep.subr.bf16.mxu0 %v3398_v20  ;;  %v3423_v44 = vld [vmem:[%s4336_s3 + $0xb0] sm:$0xff]   ;;  %v3426_v45 = vld [vmem:[%s4336_s3 + $0xf8] sm:$0xff]   ;;  %v3430_v47 = vld [vmem:[%s4336_s3 + $0x1c0] sm:$0xff]   ;;  %s3520_s17 = smov 64  }
  0x11   : > { %v3382_v6 = vld [vmem:[%s300_s20] sm:$0xff]   ;;  %v3383_v7 = vld [vmem:[%s300_s20 + $0x8] sm:$0xff]   ;;  %v3384_v8 = vld [vmem:[%s300_s20 + $0x10] sm:$0xff]   ;;  %3146 = vmatprep.subr.bf16.mxu1 %v3400_v22 }
  0x12   : > { %3298 = vmatprep.mubr.msk.bf16.mxu0 %vm404_vm1, %v3382_v6  ;;  %v3385_v9 = vld [vmem:[%s300_s20 + $0x18] sm:$0xff]   ;;  %v3386_v10 = vld [vmem:[%s300_s20 + $0x20] sm:$0xff]   ;;  %v3387_v11 = vld [vmem:[%s300_s20 + $0x28] sm:$0xff]  }
  0x13   : > { %3299 = vmatmul.mubr.msk.bf16.vlgmr.msra.gmra.mrb[0].mxu0 %vm404_vm1, %v3383_v7  ;;  %v3388_v12 = vld [vmem:[%s300_s20 + $0x30] sm:$0xff]   ;;  %v3389_v13 = vld [vmem:[%s300_s20 + $0x38] sm:$0xff]   ;;  %v3390_v14 = vld [vmem:[%s300_s20 + $0x40] sm:$0xff]  }
  0x14   : > { %3302 = vmatprep.mubr.msk.bf16.mxu0 %vm404_vm1, %v3384_v8  ;;  %v3391_v15 = vld [vmem:[%s300_s20 + $0x48] sm:$0xff]   ;;  %3163 = vmatpush3.bf16.msra.mxu0 %v3399_v21  ;;  %v3427_v46 = vld [vmem:[%s4336_s3 + $0xb8] sm:$0xff]   ;;  %v3704_v51 = vld [vmem:[%s4335_s2] ss:$0 sm:$0xff] }
  0x15   : > { %3147 = vmatpush3.bf16.msra.mxu1 %v3401_v23  ;;  %3164 = vmatprep.subr.bf16.mxu0 %v3402_v24  ;;  %vm662_vm6 = vmor %vm660_vm2, %vm661_vm3 }
  0x16   : > { %3148 = vmatprep.subr.bf16.mxu1 %v3404_v26  ;;  %vm664_vm7 = vmor %vm662_vm6, %vm663_vm4 }
  0x17   : > { %vm3752_vm8 = vmor %vm664_vm7, %vm665_vm5 }
  0x18   : > { %3165 = vmatpush3.bf16.msra.mxu0 %v3403_v25 }
  0x19   : > { %3149 = vmatpush3.bf16.msra.mxu1 %v3405_v27  ;;  %3166 = vmatprep.subr.bf16.mxu0 %v3406_v28 }
  0x1a   : > { %3150 = vmatprep.subr.bf16.mxu1 %v3408_v30 }
  0x1b   : > { %3303 = vmatmul.mubr.msk.bf16.gmra.mrb[4].mxu0 %vm404_vm1, %v3385_v9 }
  0x1c   : > { %3306 = vmatprep.mubr.msk.bf16.mxu0 %vm404_vm1, %v3386_v10  ;;  %3167 = vmatpush3.bf16.msra.mxu0 %v3407_v29 }
  0x1d   : > { %3151 = vmatpush3.bf16.msra.mxu1 %v3409_v31  ;;  %3168 = vmatprep.subr.bf16.mxu0 %v3410_v32 }
  0x1e   : > { %3152 = vmatprep.subr.bf16.mxu1 %v3412_v34 }
  0x20   : > { %3169 = vmatpush3.bf16.msra.mxu0 %v3411_v33 }
  0x21   : > { %3153 = vmatpush3.bf16.msra.mxu1 %v3413_v35  ;;  %3170 = vmatprep.subr.bf16.mxu0 %v3414_v36 }
  0x22   : > { %3154 = vmatprep.subr.bf16.mxu1 %v3416_v38 }
  0x23   : > { %3307 = vmatmul.mubr.msk.bf16.gmra.mrb[8].mxu0 %vm404_vm1, %v3387_v11 }
  0x24   : > { %3310 = vmatprep.mubr.msk.bf16.mxu0 %vm404_vm1, %v3388_v12  ;;  %3171 = vmatpush3.bf16.msra.mxu0 %v3415_v37 }
  0x25   : > { %3155 = vmatpush3.bf16.msra.mxu1 %v3417_v39  ;;  %3172 = vmatprep.subr.bf16.mxu0 %v3418_v40 }
  0x26   : > { %3184 = vmatprep.subr.bf16.mxu1 %v3420_v42 }
  0x28   : > { %3173 = vmatpush3.bf16.msra.mxu0 %v3419_v41 }
  0x29   : > { %3174 = vmatprep.subr.bf16.mxu0 %v3422_v43 }
  0x2b   : > { %3311 = vmatmul.mubr.msk.bf16.gmra.mrb[12].mxu0 %vm404_vm1, %v3389_v13 }
  0x2c   : > { %3314 = vmatprep.mubr.msk.bf16.mxu0 %vm404_vm1, %v3390_v14  ;;  %3175 = vmatpush3.bf16.msra.mxu0 %v3423_v44 }
  0x2d   : > { %3176 = vmatprep.subr.bf16.mxu0 %v3426_v45 }
  0x30   : > { %3177 = vmatpush3.bf16.msra.mxu0 %v3427_v46 }
  0x31   : > { %3206 = vmatprep.subr.bf16.mxu0 %v3430_v47 }
  0x33   : > { %3315 = vmatmul.mubr.msk.bf16.gmra.mrb[16].mxu0 %vm404_vm1, %v3391_v15 }
  0xe6   : > { %v3300_v54 = vpop.f32.mrb[0].mxu0 }
  0xe7   : > { %v482_v55 = vadd.f32 %v3300_v54, %v3704_v51  ;;  %v473_v56 = vpop.f32.mrb[1].mxu0 }
  0xe8   : > { %v474_v57 = vadd.f32 %v3704_v51, %v473_v56  ;;  %v3301_v58 = vpop.f32.mrb[2].mxu0 }
  0xe9   : > { %v3710_v59 = vmax.f32 %v482_v55, 0.0  ;;  %v485_v61 = vadd.f32 %v3301_v58, %v3704_v51  ;;  %v476_v62 = vpop.f32.mrb[3].mxu0 }
  0xea   : > { %v3716_v63 = vmax.f32 %v474_v57, 0.0  ;;  %v477_v0 = vadd.f32 %v3704_v51, %v476_v62 }
  0xeb   : > { %v3105_v1 = vpack.c.bf16 %v3710_v59, %v3710_v59  ;;  %v3721_v2 = vmax.f32 %v485_v61, 0.0 }
  0xec   : > { %v3103_v3 = vpack.c.bf16 %v3716_v63, %v3716_v63  ;;  %v3725_v4 = vmax.f32 %v477_v0, 0.0 }
  0xed   : > { %v650_v5 = vrot.slane %v3105_v1, %v3713_v60  ;;  %v573_v6 = vpack.c.bf16 %v3721_v2, %v3710_v59  ;;  %v3106_v7 = vpack.c.bf16 %v3721_v2, %v3721_v2 }
  0xee   : > { %v634_v8 = vrot.slane %v3103_v3, %v3713_v60  ;;  %v572_v9 = vpack.c.bf16 %v3725_v4, %v3716_v63  ;;  %v3104_v10 = vpack.c.bf16 %v3725_v4, %v3725_v4  ;;  %v3125_v11 = vpack.c.bf16 %v3710_v59, %v3725_v4  ;;  %v3304_v12 = vpop.f32.mrb[4].mxu0  ;;  %v3424_v4 = vld [vmem:[%s4336_s3 + $0x148] sm:$0xff]  }
  0xef   : > { %v651_v13 = vcombine.high %v650_v5, %v650_v5  ;;  %v696_v14 = vshrl.u32 %v650_v5, 16  ;;  %v699_v15 = vshll.u32 %v650_v5, 16  ;;  %v658_v16 = vrot.slane %v3106_v7, %v3713_v60  ;;  %v489_v17 = vpop.f32.mrb[5].mxu0 }
  0xf0   : > { %v635_v18 = vcombine.high %v634_v8, %v634_v8  ;;  %v668_v19 = vshrl.u32 %v634_v8, 16  ;;  %v671_v20 = vshll.u32 %v634_v8, 16  ;;  %v642_v21 = vrot.slane %v3104_v10, %v3713_v60  ;;  %v3305_v22 = vpop.f32.mrb[6].mxu0 }
  0xf1   : > { %v698_v23 = vrot.slane %v696_v14, 6  ;;  %v701_v24 = vrot.slane %v699_v15, 7  ;;  %v3743_v25 = vshll.u32 %v651_v13, 16  ;;  %v659_v26 = vcombine.high %v658_v16, %v658_v16  ;;  %v492_v27 = vpop.f32.mrb[7].mxu0 }
  0xf2   : > { %v670_v28 = vrot.slane %v668_v19, 6  ;;  %v673_v29 = vrot.slane %v671_v20, 7  ;;  %v677_v30 = vshll.u32 %v635_v18, 16  ;;  %v710_v31 = vshrl.u32 %v658_v16, 16 }
  0xf3   : > { %v702_v32 = vor.u32 %v701_v24, %v698_v23  ;;  %v707_v33 = vrot.slane %v3743_v25, 7  ;;  %v713_v34 = vshll.u32 %v658_v16, 16  ;;  %v3747_v35 = vshll.u32 %v659_v26, 16 }
  0xf4   : > { %v674_v36 = vor.u32 %v673_v29, %v670_v28  ;;  %v679_v37 = vrot.slane %v677_v30, 7  ;;  %v712_v38 = vrot.slane %v710_v31, 6  ;;  %v643_v39 = vcombine.high %v642_v21, %v642_v21 }
  0xf5   : > { %v3749_v40 = vrot.slane %v702_v32, 2  ;;  %v715_v42 = vrot.slane %v713_v34, 7  ;;  %v721_v43 = vrot.slane %v3747_v35, 7  ;;  %v682_v44 = vshrl.u32 %v642_v21, 16 }
  0xf6   : > { %v675_v45 = vrot.slane %v674_v36, 2  ;;  %v685_v46 = vshll.u32 %v642_v21, 16  ;;  %v3757_v47 = vshll.u32 %v643_v39, 16  ;;  %v3760_v48 = vrot.slane %v3125_v11, %v3713_v60  ;;  %v3308_v49 = vpop.f32.mrb[8].mxu0 }
  0xf7   : > { %v716_v50 = vor.u32 %v715_v42, %v712_v38  ;;  %v684_v52 = vrot.slane %v682_v44, 6  ;;  %v498_v54 = vadd.f32 %v3304_v12, %v3704_v51  ;;  %v490_v55 = vadd.f32 %v3704_v51, %v489_v17  ;;  %v505_v56 = vpop.f32.mrb[9].mxu0 }
  0xf8   : > { %v3766_v57 = vsel %vm3752_vm8, %v675_v45, %v679_v37  ;;  %v687_v58 = vrot.slane %v685_v46, 7  ;;  %v693_v61 = vrot.slane %v3757_v47, 7  ;;  %v501_v62 = vadd.f32 %v3305_v22, %v3704_v51  ;;  %v3309_v0 = vpop.f32.mrb[10].mxu0 }
  0xf9   : > { %v3770_v1 = vrot.slane %v716_v50, 2  ;;  %v558_v3 = vmax.f32 %v498_v54, 0.0  ;;  %v556_v5 = vmax.f32 %v490_v55, 0.0  ;;  %v493_v7 = vadd.f32 %v3704_v51, %v492_v27  ;;  %v508_v8 = vpop.f32.mrb[11].mxu0 }
  0xfa   : > { %v688_v10 = vor.u32 %v687_v58, %v684_v52  ;;  %v559_v11 = vmax.f32 %v501_v62, 0.0  ;;  %v514_v12 = vadd.f32 %v3308_v49, %v3704_v51  ;;  %v506_v13 = vadd.f32 %v3704_v51, %v505_v56 }
  0xfb   : > { %v3107_v14 = vpack.c.bf16 %v556_v5, %v556_v5  ;;  %v3126_v15 = vpack.c.bf16 %v556_v5, %v3721_v2  ;;  %v557_v16 = vmax.f32 %v493_v7, 0.0  ;;  %v517_v17 = vadd.f32 %v3309_v0, %v3704_v51 }
  0xfc   : > { %v3777_v18 = vrot.slane %v688_v10, 2  ;;  %v3779_v19 = vpack.c.bf16 %v559_v11, %v558_v3  ;;  %v562_v20 = vmax.f32 %v514_v12, 0.0  ;;  %v560_v21 = vmax.f32 %v506_v13, 0.0 }
  0xfd   : > { %v817_v22 = vrot.slane %v3107_v14, %v3713_v60  ;;  %v3783_v23 = vrot.slane %v3126_v15, %v3713_v60  ;;  %v3785_v24 = vpack.c.bf16 %v558_v3, %v557_v16  ;;  %v563_v26 = vmax.f32 %v517_v17, 0.0 }
  0xfe   : > { %v967_v27 = vrot.slane %v3779_v19, %v3713_v60  ;;  %v3113_v28 = vpack.c.bf16 %v562_v20, %v562_v20  ;;  %v3122_v29 = vpack.c.bf16 %v560_v21, %v559_v11  ;;  %v509_v30 = vadd.f32 %v3704_v51, %v508_v8  ;;  %v3312_v31 = vpop.f32.mrb[12].mxu0 }
  0xff   : > { %v818_v32 = vcombine.high %v817_v22, %v817_v22  ;;  %v820_v34 = vshrl.u32 %v817_v22, 16  ;;  %v823_v36 = vshll.u32 %v817_v22, 16  ;;  %v957_v37 = vcombine.low %v3760_v48, %v3783_v23  ;;  %v521_v38 = vpop.f32.mrb[13].mxu0  ;;  %v3462_v48 = vld [vmem:[%s4336_s3 + $0x230] sm:$0xff]   ;;  %v3463_v23 = vld [vmem:[%s4336_s3 + $0x238] sm:$0xff]  }
 0x100   : > { %v729_v39 = vrot.slane %v3113_v28, %v3713_v60  ;;  %v577_v42 = vpack.c.bf16 %v563_v26, %v562_v20  ;;  %v3114_v44 = vpack.c.bf16 %v563_v26, %v563_v26  ;;  %v561_v45 = vmax.f32 %v509_v30, 0.0  ;;  %v3313_v46 = vpop.f32.mrb[14].mxu0 }
 0x101   : > { %v822_v49 = vrot.slane %v820_v34, 6  ;;  %v825_v50 = vrot.slane %v823_v36, 7  ;;  %v3793_v52 = vshll.u32 %v818_v32, 16  ;;  %v522_v54 = vadd.f32 %v3704_v51, %v521_v38  ;;  %v524_v55 = vpop.f32.mrb[15].mxu0 }
 0x102   : > { %v730_v56 = vcombine.high %v729_v39, %v729_v39  ;;  %v756_v58 = vshrl.u32 %v729_v39, 16  ;;  %v759_v62 = vshll.u32 %v729_v39, 16  ;;  %v737_v0 = vrot.slane %v3114_v44, %v3713_v60 }
 0x103   : > { %v826_v3 = vor.u32 %v825_v50, %v822_v49  ;;  %v831_v5 = vrot.slane %v3793_v52, 7  ;;  %v3799_v7 = vrot.slane %v577_v42, %v3713_v60  ;;  %v3801_v8 = vpack.c.bf16 %v561_v45, %v560_v21  ;;  %v3436_v52 = vld [vmem:[%s4336_s3 + $0x160] sm:$0xff]  }
 0x104   : > { %v758_v10 = vrot.slane %v756_v58, 6  ;;  %v761_v11 = vrot.slane %v759_v62, 7  ;;  %v3803_v12 = vshll.u32 %v730_v56, 16  ;;  %v738_v13 = vcombine.high %v737_v0, %v737_v0 }
 0x105   : > { %v3805_v14 = vrot.slane %v826_v3, 2  ;;  %v770_v15 = vshrl.u32 %v737_v0, 16  ;;  %v773_v16 = vshll.u32 %v737_v0, 16  ;;  %v974_v17 = vrot.slane %v3801_v8, %v3713_v60 }
 0x106   : > { %v762_v20 = vor.u32 %v761_v11, %v758_v10  ;;  %v767_v22 = vrot.slane %v3803_v12, 7  ;;  %v3810_v26 = vshll.u32 %v738_v13, 16  ;;  %v564_v28 = vmax.f32 %v522_v54, 0.0  ;;  %v3316_v21 = vpop.f32.mrb[16].mxu0  ;;  %v3431_v12 = vld [vmem:[%s4336_s3 + $0x180] sm:$0xff]  }
 0x107   : > { %v772_v30 = vrot.slane %v770_v15, 6  ;;  %v775_v31 = vrot.slane %v773_v16, 7  ;;  %v533_v32 = vadd.f32 %v3313_v46, %v3704_v51  ;;  %v525_v34 = vadd.f32 %v3704_v51, %v524_v55  ;;  %v537_v36 = vpop.f32.mrb[17].mxu0 }
 0x108   : > { %v3814_v38 = vrot.slane %v762_v20, 2  ;;  %v781_v39 = vrot.slane %v3810_v26, 7  ;;  %v3115_v42 = vpack.c.bf16 %v564_v28, %v564_v28  ;;  %v859_v44 = vrot.slane %v3785_v24, %v3713_v60  ;;  %v3317_v45 = vpop.f32.mrb[18].mxu0 }
 0x109   : > { %v776_v49 = vor.u32 %v775_v31, %v772_v30  ;;  %v567_v50 = vmax.f32 %v533_v32, 0.0  ;;  %v565_v54 = vmax.f32 %v525_v34, 0.0  ;;  %v866_v56 = vrot.slane %v3122_v29, %v3713_v60  ;;  %v540_v58 = vpop.f32.mrb[19].mxu0  ;;  %v3421_v29 = vld [vmem:[%s4336_s3 + $0x100] sm:$0xff]  }
 0x10a   : > { %v745_v46 = vrot.slane %v3115_v42, %v3713_v60  ;;  %v841_v55 = vrot.slane %v572_v9, %v3713_v60  ;;  %v848_v62 = vrot.slane %v573_v6, %v3713_v60  ;;  %v546_v24 = vadd.f32 %v3316_v21, %v3704_v51 }
 0x10b   : > { %v777_v0 = vrot.slane %v776_v49, 2  ;;  %v578_v3 = vpack.c.bf16 %v565_v54, %v564_v28  ;;  %v3116_v10 = vpack.c.bf16 %v565_v54, %v565_v54  ;;  %v867_v11 = vcombine.low %v859_v44, %v866_v56  ;;  %v3425_v44 = vld [vmem:[%s4336_s3 + $0x108] sm:$0xff]  }
 0x10c   : > { %v746_v13 = vcombine.high %v745_v46, %v745_v46  ;;  %v784_v15 = vshrl.u32 %v745_v46, 16  ;;  %v787_v16 = vshll.u32 %v745_v46, 16  ;;  %v849_v63 = vcombine.low %v841_v55, %v848_v62 }
 0x10d   : > { %v753_v59 = vrot.slane %v3116_v10, %v3713_v60  ;;  %v902_v2 = vrot.slane %v578_v3, %v3713_v60  ;;  %1610 = vmatprep.mubr.bf16.mxu1 %v867_v11  ;;  %v570_v6 = vmax.f32 %v546_v24, 0.0  ;;  %v538_v9 = vadd.f32 %v3704_v51, %v537_v36  ;;  %v3428_v36 = vld [vmem:[%s4336_s3 + $0x150] sm:$0xff]  }
 0x10e   : > { %v786_v20 = vrot.slane %v784_v15, 6  ;;  %v789_v28 = vrot.slane %v787_v16, 7  ;;  %v793_v21 = vshll.u32 %v746_v13, 16  ;;  %1611 = vmatmul.mubr.bf16.vlgmr.msra.gmra.mrb[0].mxu1 %v849_v63  ;;  %v541_v30 = vadd.f32 %v3704_v51, %v540_v58  ;;  %v3434_v13 = vld [vmem:[%s4336_s3 + $0x1c8] sm:$0xff]  }
 0x10f   : > { %v754_v31 = vcombine.high %v753_v59, %v753_v59  ;;  %v798_v32 = vshrl.u32 %v753_v59, 16  ;;  %v801_v34 = vshll.u32 %v753_v59, 16  ;;  %3185 = vmatpush3.bf16.msra.mxu1 %v3421_v29  ;;  %v568_v42 = vmax.f32 %v538_v9, 0.0  ;;  %v3437_v59 = vld [vmem:[%s4336_s3 + $0x120] sm:$0xff]   ;;  %v3440_v9 = vld [vmem:[%s4336_s3 + $0x168] sm:$0xff]  }
 0x110   : > { %v790_v45 = vor.u32 %v789_v28, %v786_v20  ;;  %v795_v49 = vrot.slane %v793_v21, 7  ;;  %3186 = vmatprep.subr.bf16.mxu1 %v3424_v4  ;;  %v569_v54 = vmax.f32 %v541_v30, 0.0  ;;  %v903_v56 = vcombine.low %v3799_v7, %v902_v2  ;;  %v3435_v4 = vld [vmem:[%s4336_s3 + $0x188] sm:$0xff]   ;;  %v3438_v2 = vld [vmem:[%s4336_s3 + $0x1d0] sm:$0xff]   ;;  %v3442_v21 = vld [vmem:[%s4336_s3 + $0x1d8] sm:$0xff]  }
 0x111   : > { %v800_v51 = vrot.slane %v798_v32, 6  ;;  %v803_v58 = vrot.slane %v801_v34, 7  ;;  %v807_v46 = vshll.u32 %v754_v31, 16  ;;  %v3123_v55 = vpack.c.bf16 %v568_v42, %v567_v50  ;;  %v3429_v50 = vld [vmem:[%s4336_s3 + $0x110] sm:$0xff]   ;;  %v3441_v28 = vld [vmem:[%s4336_s3 + $0x128] sm:$0xff]   ;;  %v3443_v31 = vld [vmem:[%s4336_s3 + $0x198] sm:$0xff]  }
 0x112   : > { %v791_v62 = vrot.slane %v790_v45, 2  ;;  %v3124_v24 = vpack.c.bf16 %v570_v6, %v569_v54  ;;  %1651 = vmatprep.mubr.bf16.mxu0 %v903_v56  ;;  %v694_v3 = vsel %vm3752_vm8, %v3777_v18, %v693_v61  ;;  %v708_v10 = vsel %vm3752_vm8, %v3749_v40, %v707_v33  ;;  %v3432_v61 = vld [vmem:[%s4336_s3 + $0x158] sm:$0xff]   ;;  %v3439_v20 = vld [vmem:[%s4336_s3 + $0x190] sm:$0xff]   ;;  %v3446_v34 = vld [vmem:[%s4336_s3 + $0x1e0] sm:$0xff]  }
 0x113   : > { %v804_v7 = vor.u32 %v803_v58, %v800_v51  ;;  %v809_v11 = vrot.slane %v807_v46, 7  ;;  %v913_v29 = vrot.slane %v3123_v55, %v3713_v60  ;;  %3187 = vmatpush3.bf16.msra.mxu1 %v3425_v44  ;;  %v722_v47 = vsel %vm3752_vm8, %v3770_v1, %v721_v43  ;;  %v3444_v30 = vld [vmem:[%s4336_s3 + $0x170] sm:$0xff]   ;;  %v3448_v42 = vld [vmem:[%s4336_s3 + $0x178] sm:$0xff]   ;;  %v3447_v44 = vld [vmem:[%s4336_s3 + $0x1a0] sm:$0xff]  }
 0x114   : > { %v920_v25 = vrot.slane %v3124_v24, %v3713_v60  ;;  %3188 = vmatprep.subr.bf16.mxu1 %v3428_v36  ;;  %v869_v33 = vcombine.low %v3766_v57, %v694_v3  ;;  %v870_v40 = vcombine.low %v708_v10, %v722_v47  ;;  %v975_v35 = vcombine.low %v967_v27, %v974_v17  ;;  %v3445_v32 = vld [vmem:[%s4336_s3 + $0x130] sm:$0xff]   ;;  %v3449_v45 = vld [vmem:[%s4336_s3 + $0x138] sm:$0xff]   ;;  %v3451_v54 = vld [vmem:[%s4336_s3 + $0x1a8] sm:$0xff]  }
 0x115   : > { %v805_v18 = vrot.slane %v804_v7, 2  ;;  %v768_v43 = vsel %vm3752_vm8, %v3814_v38, %v767_v22  ;;  %v782_v57 = vsel %vm3752_vm8, %v777_v0, %v781_v39  ;;  %v796_v1 = vsel %vm3752_vm8, %v791_v62, %v795_v49  ;;  %v3433_v0 = vld [vmem:[%s4336_s3 + $0x118] sm:$0xff]   ;;  %v3450_v49 = vld [vmem:[%s4336_s3 + $0x1e8] sm:$0xff]   ;;  %v3452_v36 = vld [vmem:[%s4336_s3 + $0x200] sm:$0xff]  }
 0x116   : > { %v3888_v8 = vcombine.low %v913_v29, %v920_v25  ;;  %v877_v19 = vrot.slane %v869_v33, %v3713_v60  ;;  %v884_v27 = vrot.slane %v870_v40, %v3713_v60  ;;  %v923_v17 = vcombine.low %v768_v43, %v782_v57  ;;  %v3453_v56 = vld [vmem:[%s4336_s3 + $0x1f0] sm:$0xff]   ;;  %v3455_v46 = vld [vmem:[%s4336_s3 + $0x208] sm:$0xff]   ;;  %v3456_v55 = vld [vmem:[%s4336_s3 + $0x1f8] sm:$0xff]  }
 0x117   : > { %3189 = vmatpush3.bf16.msra.mxu1 %v3429_v50  ;;  %v810_v22 = vsel %vm3752_vm8, %v805_v18, %v809_v11  ;;  %v832_v26 = vsel %vm3752_vm8, %v3805_v14, %v831_v5  ;;  %v977_v38 = vcombine.low %v694_v3, %v708_v10  ;;  %v3517_v51 = vmov 0.0   ;;  %v3454_v58 = vld [vmem:[%s4336_s3 + $0x1b0] sm:$0xff]   ;;  %v3457_v62 = vld [vmem:[%s4336_s3 + $0x1b8] sm:$0xff]   ;;  %v3460_v10 = vld [vmem:[%s4336_s3 + $0x220] sm:$0xff]  }
 0x118   : > { %v885_v39 = vcombine.low %v877_v19, %v884_v27  ;;  %3190 = vmatprep.subr.bf16.mxu1 %v3432_v61  ;;  %v924_v15 = vcombine.low %v796_v1, %v810_v22  ;;  %v978_v16 = vcombine.low %v722_v47, %v832_v26  ;;  %v931_v5 = vrot.slane %v923_v17, %v3713_v60  ;;  %v3458_v24 = vld [vmem:[%s4336_s3 + $0x210] sm:$0xff]   ;;  %v3459_v3 = vld [vmem:[%s4336_s3 + $0x218] sm:$0xff]   ;;  %v3461_v7 = vld [vmem:[%s4336_s3 + $0x228] sm:$0xff]  }
 0x119   : > { %v3912_v41 = vrot.slane %v977_v38, %v3713_v60  ;;  %v2964_v40 = vld [vmem:[%s4337_s4] ss:$0 sm:$0xff] }
 0x11a   : > { %1652 = vmatmul.mubr.bf16.vlgmr.msra.gmra.mrb[20].mxu0 %v885_v39  ;;  %v938_v14 = vrot.slane %v924_v15, %v3713_v60  ;;  %v3917_v63 = vrot.slane %v978_v16, %v3713_v60 }
 0x11b   : > { %3207 = vmatpush3.bf16.msra.mxu0 %v3431_v12  ;;  %1733 = vmatprep.mubr.bf16.mxu0 %v975_v35 }
 0x11c   : > { %3191 = vmatpush3.bf16.msra.mxu1 %v3433_v0  ;;  %3208 = vmatprep.subr.bf16.mxu0 %v3434_v13  ;;  %v939_v6 = vcombine.low %v931_v5, %v938_v14  ;;  %v993_v60 = vcombine.low %v3912_v41, %v3917_v63 }
 0x11d   : > { %3192 = vmatprep.subr.bf16.mxu1 %v3436_v52 }
 0x11e   : > { %1692 = vmatprep.mubr.bf16.mxu1 %v939_v6 }
 0x11f   : > { %3209 = vmatpush3.bf16.msra.mxu0 %v3435_v4 }
 0x120   : > { %3193 = vmatpush3.bf16.msra.mxu1 %v3437_v59  ;;  %3210 = vmatprep.subr.bf16.mxu0 %v3438_v2 }
 0x121   : > { %3194 = vmatprep.subr.bf16.mxu1 %v3440_v9 }
 0x123   : > { %3211 = vmatpush3.bf16.msra.mxu0 %v3439_v20 }
 0x124   : > { %3195 = vmatpush3.bf16.msra.mxu1 %v3441_v28  ;;  %3212 = vmatprep.subr.bf16.mxu0 %v3442_v21 }
 0x125   : > { %3196 = vmatprep.subr.bf16.mxu1 %v3444_v30 }
 0x127   : > { %3213 = vmatpush3.bf16.msra.mxu0 %v3443_v31 }
 0x128   : > { %3197 = vmatpush3.bf16.msra.mxu1 %v3445_v32  ;;  %3214 = vmatprep.subr.bf16.mxu0 %v3446_v34  ;;  %v1786_v32 = vld [vmem:[%s4338_s5 + $0x8] sm:$0xff]  ;;  %v1787_v34 = vld [vmem:[%s4338_s5 + $0x10] sm:$0xff] }
 0x129   : > { %3198 = vmatprep.subr.bf16.mxu1 %v3448_v42  ;;  %v1788_v42 = vld [vmem:[%s4338_s5 + $0x18] sm:$0x1] }
 0x12b   : > { %3215 = vmatpush3.bf16.msra.mxu0 %v3447_v44  ;;  %v3464_v44 = vld [vmem:[%s4339_s6 + $0x40] sm:$0xff]  }
 0x12c   : > { %3199 = vmatpush3.bf16.msra.mxu1 %v3449_v45  ;;  %3216 = vmatprep.subr.bf16.mxu0 %v3450_v49  ;;  %v3465_v45 = vld [vmem:[%s4339_s6] sm:$0xff]  }
 0x12d   : > { %3318 = vmatprep.subr.bf16.mxu1 %v3517_v51  ;;  %v3466_v49 = vld [vmem:[%s4339_s6 + $0xc0] sm:$0xff]  }
 0x12f   : > { %3217 = vmatpush3.bf16.msra.mxu0 %v3451_v54  ;;  %1693 = vmatmul.mubr.bf16.vlgmr.msra.gmra.mrb[4].mxu1 %v3888_v8  ;;  %v3467_v54 = vld [vmem:[%s4339_s6 + $0x48] sm:$0xff]  }
 0x130   : > { %3319 = vmatpush3.bf16.msra.mxu1 %v3452_v36  ;;  %3218 = vmatprep.subr.bf16.mxu0 %v3453_v56  ;;  %v3468_v36 = vld [vmem:[%s4339_s6 + $0x80] sm:$0xff]   ;;  %v3470_v56 = vld [vmem:[%s4339_s6 + $0xc8] sm:$0xff]  }
 0x131   : > { %3320 = vmatprep.subr.bf16.mxu1 %v3517_v51  ;;  %3334 = vmatprep.mubr.msk.bf16.mxu1 %vm3518_vm9, %v3517_v51 }
 0x133   : > { %3219 = vmatpush3.bf16.msra.mxu0 %v3454_v58  ;;  %v3469_v58 = vld [vmem:[%s4339_s6 + $0x8] sm:$0xff]  }
 0x134   : > { %3321 = vmatpush3.bf16.msra.mxu1 %v3455_v46  ;;  %3220 = vmatprep.subr.bf16.mxu0 %v3456_v55  ;;  %v3472_v46 = vld [vmem:[%s4339_s6 + $0x88] sm:$0xff]   ;;  %v3471_v55 = vld [vmem:[%s4339_s6 + $0x50] sm:$0xff]  }
 0x135   : > { %3322 = vmatprep.subr.bf16.mxu1 %v3517_v51 }
 0x137   : > { %3221 = vmatpush3.bf16.msra.mxu0 %v3457_v62  ;;  %v3474_v62 = vld [vmem:[%s4339_s6 + $0xd0] sm:$0xff]  }
 0x138   : > { %3323 = vmatpush3.bf16.msra.mxu1 %v3458_v24  ;;  %3243 = vmatprep.subr.bf16.mxu0 %v3464_v44  ;;  %v3473_v24 = vld [vmem:[%s4339_s6 + $0x10] sm:$0xff]  }
 0x139   : > { %3324 = vmatprep.subr.bf16.mxu1 %v3517_v51 }
 0x13a   : > { %1734 = vmatmul.mubr.bf16.vlgmr.msra.gmra.mrb[24].mxu0 %v957_v37  ;;  %v1785_v37 = vld [vmem:[%s4338_s5] sm:$0xff] }
 0x13b   : > { %3244 = vmatpush3.bf16.msra.mxu0 %v3465_v45 }
 0x13c   : > { %3325 = vmatpush3.bf16.msra.mxu1 %v3459_v3  ;;  %3245 = vmatprep.subr.bf16.mxu0 %v3467_v54  ;;  %v3476_v3 = vld [vmem:[%s4339_s6 + $0x90] sm:$0xff]  }
 0x13d   : > { %3326 = vmatprep.subr.bf16.mxu1 %v3517_v51 }
 0x13f   : > { %3246 = vmatpush3.bf16.msra.mxu0 %v3469_v58  ;;  %v3491_v58 = vld [vmem:[%s4339_s6 + $0x78] sm:$0xff]  }
 0x140   : > { %3327 = vmatpush3.bf16.msra.mxu1 %v3460_v10  ;;  %3247 = vmatprep.subr.bf16.mxu0 %v3471_v55  ;;  %v3475_v10 = vld [vmem:[%s4339_s6 + $0x58] sm:$0xff]  }
 0x141   : > { %3328 = vmatprep.subr.bf16.mxu1 %v3517_v51  ;;  %v3493_v55 = vld [vmem:[%s4339_s6 + $0x38] sm:$0xff]  }
 0x143   : > { %3248 = vmatpush3.bf16.msra.mxu0 %v3473_v24 }
 0x144   : > { %3329 = vmatpush3.bf16.msra.mxu1 %v3461_v7  ;;  %v3478_v7 = vld [vmem:[%s4339_s6 + $0xd8] sm:$0xff]   ;;  %3249 = vmatprep.subr.bf16.mxu0 %v3475_v10 }
 0x145   : > { %3330 = vmatprep.subr.bf16.mxu1 %v3517_v51 }
 0x148   : > { %3331 = vmatpush3.bf16.msra.mxu1 %v3462_v48  ;;  %v3477_v48 = vld [vmem:[%s4339_s6 + $0x18] sm:$0xff]  }
 0x149   : > { %3332 = vmatprep.subr.bf16.mxu1 %v3517_v51  ;;  %3250 = vmatpush3.bf16.msra.mxu0 %v3477_v48 }
 0x14c   : > { %3333 = vmatpush3.bf16.msra.mxu1 %v3463_v23  ;;  %v3480_v23 = vld [vmem:[%s4339_s6 + $0x98] sm:$0xff]  }
 0x14f   : > { %3335 = vmatmul.mubr.bf16.vlgmr.msra.gmra.mrb[8].mxu1 %v993_v60 }
 0x150   : > { %3342 = vmatprep.mubr.msk.f32.mxu1 %vm1789_vm10, %v1785_v37  ;;  %v3479_v37 = vld [vmem:[%s4339_s6 + $0x60] sm:$0xff]  }
 0x151   : > { %3251 = vmatprep.subr.bf16.mxu0 %v3479_v37 }
 0x1e1   : > { %v3156_v11 = vpop.f32.mrb[0].mxu1 }
 0x1e2   : > { %v3157_v29 = vpop.f32.mrb[1].mxu1 }
 0x1e3   : > { %v3158_v50 = vadd.f32 %v3157_v29, %v3156_v11  ;;  %v3159_v47 = vpop.f32.mrb[2].mxu1  ;;  %v3482_v11 = vld [vmem:[%s4339_s6 + $0xe0] sm:$0xff]  }
 0x1e4   : > { %v3160_v25 = vpop.f32.mrb[3].mxu1  ;;  %v3481_v29 = vld [vmem:[%s4339_s6 + $0x20] sm:$0xff]  }
 0x1e5   : > { %v3161_v33 = vadd.f32 %v3160_v25, %v3159_v47  ;;  %v1613_v18 = vadd.f32 %v3158_v50, %v2964_v40  ;;  %v3484_v50 = vld [vmem:[%s4339_s6 + $0xa0] sm:$0xff]   ;;  %v3483_v47 = vld [vmem:[%s4339_s6 + $0x68] sm:$0xff]   ;;  %3252 = vmatpush3.bf16.msra.mxu0 %v3481_v29 }
 0x1e6   : > { %v3486_v25 = vld [vmem:[%s4339_s6 + $0xe8] sm:$0xff]   ;;  %3253 = vmatprep.subr.bf16.mxu0 %v3483_v47 }
 0x1e7   : > { %v1616_v8 = vadd.f32 %v3161_v33, %v2964_v40  ;;  %v3485_v33 = vld [vmem:[%s4339_s6 + $0x28] sm:$0xff]  }
 0x1e8   : > { %v3488_v40 = vld [vmem:[%s4339_s6 + $0xa8] sm:$0xff]  }
 0x1e9   : > { %3254 = vmatpush3.bf16.msra.mxu0 %v3485_v33 }
 0x1ed   : > { %v3178_v61 = vpop.f32.mrb[20].mxu0 }
 0x1ee   : > { %v3179_v35 = vpop.f32.mrb[21].mxu0 }
 0x1ef   : > { %v3180_v43 = vadd.f32 %v3179_v35, %v3178_v61  ;;  %v3181_v57 = vpop.f32.mrb[22].mxu0  ;;  %v3487_v61 = vld [vmem:[%s4339_s6 + $0x70] sm:$0xff]  }
 0x1f0   : > { %v3182_v1 = vpop.f32.mrb[23].mxu0  ;;  %v3490_v35 = vld [vmem:[%s4339_s6 + $0xf0] sm:$0xff]   ;;  %3255 = vmatprep.subr.bf16.mxu0 %v3487_v61 }
 0x1f1   : > { %v1654_v19 = vadd.f32 %v3180_v43, %v1613_v18  ;;  %v3183_v27 = vadd.f32 %v3182_v1, %v3181_v57  ;;  %v3489_v18 = vld [vmem:[%s4339_s6 + $0x30] sm:$0xff]   ;;  %v3519_v43 = vmov 1966171168  }
 0x1f2   : > { %3256 = vmatpush3.bf16.msra.mxu0 %v3489_v18  ;;  %v1893_v57 = vunpack.c.l.s4 %v3519_v43 }
 0x1f3   : > { %v1657_v17 = vadd.f32 %v3183_v27, %v1616_v8  ;;  %3257 = vmatprep.subr.bf16.mxu0 %v3491_v58 }
 0x1f4   : > { %v1894_v1 = vunpack.c.0.s8 %v1893_v57 }
 0x1f6   : > { %v4123_v8 = vsub.s32 %v1894_v1, %v3706_v53  ;;  %3258 = vmatpush3.bf16.msra.mxu0 %v3493_v55  ;;  %v3494_v1 = vld [vmem:[%s4339_s6 + $0xf8] sm:$0xff]  }
 0x1f7   : > { %3348 = vmatprep.subr.bf16.mxu0 %v3517_v51 }
 0x202   : > { %v3200_v12 = vpop.f32.mrb[4].mxu1 }
 0x203   : > { %v3201_v22 = vpop.f32.mrb[5].mxu1 }
 0x204   : > { %v3202_v26 = vadd.f32 %v3201_v22, %v3200_v12  ;;  %v3203_v38 = vpop.f32.mrb[6].mxu1 }
 0x205   : > { %v3204_v39 = vpop.f32.mrb[7].mxu1 }
 0x206   : > { %v1695_v0 = vadd.f32 %v3202_v26, %v1654_v19  ;;  %v3205_v13 = vadd.f32 %v3204_v39, %v3203_v38 }
 0x208   : > { %v1698_v15 = vadd.f32 %v3205_v13, %v1657_v17 }
 0x20d   : > { %v3222_v16 = vpop.f32.mrb[24].mxu0 }
 0x20e   : > { %v3223_v52 = vpop.f32.mrb[25].mxu0 }
 0x20f   : > { %v3224_v41 = vadd.f32 %v3223_v52, %v3222_v16  ;;  %v3225_v5 = vpop.f32.mrb[26].mxu0 }
 0x210   : > { %v3226_v14 = vpop.f32.mrb[27].mxu0 }
 0x211   : > { %v3227_v63 = vadd.f32 %v3226_v14, %v3225_v5  ;;  %v1736_v4 = vadd.f32 %v3224_v41, %v1695_v0 }
 0x213   : > { %v1739_v59 = vadd.f32 %v3227_v63, %v1698_v15 }
 0x222   : > { %v1776_v2 = vpop.f32.mrb[8].mxu1 }
 0x223   : > { %v1777_v6 = vadd.f32 %v1776_v2, %v1736_v4  ;;  %v3336_v60 = vpop.f32.mrb[9].mxu1 }
 0x224   : > { %v1779_v9 = vpop.f32.mrb[10].mxu1 }
 0x225   : > { %v1780_v20 = vadd.f32 %v1779_v9, %v1739_v59  ;;  %v3337_v28 = vpop.f32.mrb[11].mxu1  ;;  %v1783_v21 = vmax.f32 %v1777_v6, 0.0 }
 0x227   : > { %v1784_v30 = vmax.f32 %v1780_v20, 0.0 }
 0x229   : > { %v3360_v31 = vpack.c.bf16 %v1784_v30, %v1783_v21 }
 0x22b   : > { %3361 = vmatprep.subr.bf16.mxu1 %v3360_v31 }
 0x22c   : > { %3363 = vmatpush3.bf16.msra.mxu1 %v3360_v31 }
 0x22d   : > { %3265 = vmatprep.subr.bf16.mxu1 %v3466_v49 }
 0x22f   : > { %3343 = vmatmul.mubr.msk.f32.vlgmr.msra.gmra.mrb[12].mxu1 %vm1789_vm10, %v1786_v32 }
 0x230   : > { %3345 = vmatprep.mubr.msk.f32.mxu1 %vm1789_vm10, %v1787_v34  ;;  %3266 = vmatpush3.bf16.msra.mxu1 %v3468_v36 }
 0x231   : > { %3267 = vmatprep.subr.bf16.mxu1 %v3470_v56 }
 0x233   : > { %3346 = vmatmul.mubr.msk.f32.gmra.mrb[14].mxu1 %vm1789_vm10, %v1788_v42 }
 0x234   : > { %3268 = vmatpush3.bf16.msra.mxu1 %v3472_v46  ;;  %v3492_v46 = vld [vmem:[%s4339_s6 + $0xb0] sm:$0xff]  }
 0x235   : > { %3269 = vmatprep.subr.bf16.mxu1 %v3474_v62 }
 0x238   : > { %3270 = vmatpush3.bf16.msra.mxu1 %v3476_v3 }
 0x239   : > { %3271 = vmatprep.subr.bf16.mxu1 %v3478_v7 }
 0x23c   : > { %3272 = vmatpush3.bf16.msra.mxu1 %v3480_v23 }
 0x23d   : > { %3273 = vmatprep.subr.bf16.mxu1 %v3482_v11 }
 0x240   : > { %3274 = vmatpush3.bf16.msra.mxu1 %v3484_v50 }
 0x241   : > { %3275 = vmatprep.subr.bf16.mxu1 %v3486_v25 }
 0x244   : > { %3276 = vmatpush3.bf16.msra.mxu1 %v3488_v40 }
 0x245   : > { %3277 = vmatprep.subr.bf16.mxu1 %v3490_v35 }
 0x248   : > { %3278 = vmatpush3.bf16.msra.mxu1 %v3492_v46 }
 0x249   : > { %3279 = vmatprep.subr.bf16.mxu1 %v3494_v1 }
 0x302   : > { %v3344_v19 = vpop.f32.mrb[12].mxu1 }
 0x303   : > { %v3041_v27 = vpack.c.bf16 %v3344_v19, %v3344_v19  ;;  %v1868_v17 = vpop.f32.mrb[13].mxu1 }
 0x304   : > { %v1887_v12 = vpack.c.bf16 %v3344_v19, %v1868_v17 }
 0x305   : > { %v1905_v22 = vrot.slane %v3041_v27, %v4123_v8 }
 0x306   : > { %v1898_v26 = vrot.slane %v1887_v12, %v4123_v8  ;;  %v3347_v38 = vpop.f32.mrb[14].mxu1 }
 0x307   : > { %v1907_v39 = vcombine.high %v1905_v22, %v1905_v22  ;;  %v4128_v0 = vrot.slane %v1905_v22, %v4123_v8  ;;  %v3042_v13 = vpack.c.bf16 %v3347_v38, %v3347_v38  ;;  %v1878_v15 = vpop.f32.mrb[15].mxu1 }
 0x308   : > { %v1906_v16 = vcombine.high %v1898_v26, %v1898_v26  ;;  %v1914_v52 = vrot.slane %v1898_v26, %v4123_v8  ;;  %v1888_v53 = vpack.c.bf16 %v3347_v38, %v1878_v15 }
 0x309   : > { %v4132_v41 = vrot.slane %v1907_v39, %v4123_v8  ;;  %v4136_v5 = vcombine.high %v4128_v0, %v4128_v0  ;;  %v1954_v14 = vrot.slane %v3042_v13, %v4123_v8  ;;  %v1988_v63 = vunpack.i.h.s16 %v4128_v0 }
 0x30a   : > { %v4141_v4 = vrot.slane %v1906_v16, %v4123_v8  ;;  %v1936_v59 = vcombine.high %v1914_v52, %v1914_v52  ;;  %v1980_v2 = vunpack.i.h.s16 %v1914_v52  ;;  %v1947_v6 = vrot.slane %v1888_v53, %v4123_v8  ;;  %v3495_v53 = vld [vmem:[%s4339_s6 + $0xb8] sm:$0xff]  }
 0x30b   : > { %v4146_v60 = vcombine.high %v4132_v41, %v4132_v41  ;;  %v1969_v9 = vrot.slane %v1954_v14, %v4123_v8  ;;  %v1990_v20 = vunpack.i.h.s16 %v4132_v41  ;;  %v4151_v28 = vunpack.i.h.s16 %v4136_v5  ;;  %3280 = vmatpush3.bf16.msra.mxu1 %v3495_v53 }
 0x30c   : > { %v4155_v21 = vcombine.high %v4141_v4, %v4141_v4  ;;  %v1984_v30 = vunpack.i.h.s16 %v1936_v59  ;;  %v4158_v31 = vpack.i.b16 %v4141_v4, %v1980_v2  ;;  %v1955_v32 = vcombine.high %v1947_v6, %v1947_v6 }
 0x30d   : > { %v2003_v34 = vunpack.i.l.s16 %v1969_v9  ;;  %v4161_v42 = vrot.slane %v1947_v6, %v4123_v8  ;;  %v1994_v44 = vunpack.i.h.s16 %v4146_v60  ;;  %v3047_v45 = vpack.i.b16 %v4136_v5, %v1990_v20 }
 0x30e   : > { %v1986_v49 = vunpack.i.h.s16 %v4155_v21  ;;  %v3043_v54 = vpack.i.b16 %v1984_v30, %v4141_v4  ;;  %v4170_v36 = vrot.slane %v1955_v32, %v4123_v8  ;;  %v3049_v56 = vpack.i.b16 %v4155_v21, %v1984_v30 }
 0x30f   : > { %v2382_v62 = vrot.slane %v2003_v34, %v4123_v8  ;;  %v1996_v24 = vunpack.i.h.s16 %v4161_v42  ;;  %v3051_v3 = vpack.i.b16 %v4161_v42, %v1994_v44  ;;  %v4186_v10 = vpack.i.b16 %v1994_v44, %v4136_v5 }
 0x310   : > { %v2009_v7 = vcombine.low %v1914_v52, %v3043_v54  ;;  %v3048_v48 = vpack.i.b16 %v1986_v49, %v1936_v59  ;;  %v3050_v23 = vpack.i.b16 %v4132_v41, %v1986_v49  ;;  %v4191_v37 = vcombine.high %v4161_v42, %v4161_v42 }
 0x311   : > { %v4194_v11 = vrot.slane %v2382_v62, %v4123_v8  ;;  %v2143_v29 = vcombine.low %v3047_v45, %v3051_v3  ;;  %v2164_v50 = vrot.slane %v1996_v24, %v4123_v8  ;;  %v3059_v47 = vpack.i.b16 %v1996_v24, %v4146_v60 }
 0x312   : > { %v4199_v25 = vrot.slane %v2009_v7, %v4123_v8  ;;  %v2099_v33 = vcombine.low %v4141_v4, %v3048_v48  ;;  %v2142_v40 = vcombine.low %v3049_v56, %v3050_v23  ;;  %v4204_v61 = vcombine.high %v4170_v36, %v4170_v36 }
 0x313   : > { %v2157_v35 = vrot.slane %v2143_v29, %v4123_v8  ;;  %v2179_v18 = vrot.slane %v2164_v50, %v4123_v8  ;;  %v4209_v43 = vcombine.low %v4136_v5, %v3059_v47  ;;  %v2000_v57 = vunpack.i.h.s16 %v4191_v37 }
 0x314   : > { %v2150_v19 = vrot.slane %v2142_v40, %v4123_v8  ;;  %v2002_v27 = vunpack.i.h.s16 %v4204_v61  ;;  %v3055_v17 = vpack.i.b16 %v4170_v36, %v1996_v24  ;;  %v3057_v12 = vpack.i.b16 %v4161_v42, %v4151_v28 }
 0x315   : > { %v3058_v22 = vpack.i.b16 %v4204_v61, %v2000_v57  ;;  %v1982_v26 = vunpack.i.h.s16 %v4141_v4  ;;  %v3046_v38 = vpack.i.b16 %v4128_v0, %v1986_v49  ;;  %v2075_v39 = vrot.slane %v4151_v28, %v4123_v8 }
 0x316   : > { %v2165_v13 = vcombine.low %v2150_v19, %v2157_v35  ;;  %v2315_v15 = vcombine.low %v3047_v45, %v3057_v12  ;;  %v2337_v16 = vrot.slane %v2002_v27, %v4123_v8  ;;  %v1998_v52 = vunpack.i.h.s16 %v4170_v36 }
 0x317   : > { %v2316_v14 = vcombine.low %v3055_v17, %v3058_v22  ;;  %v3045_v59 = vpack.i.b16 %v4155_v21, %v1982_v26  ;;  %v2054_v4 = vcombine.low %v3046_v38, %v3047_v45  ;;  %v2090_v2 = vrot.slane %v2075_v39, %v4123_v8 }
 0x318   : > { %v2172_v6 = vrot.slane %v2165_v13, %v4123_v8  ;;  %v2323_v9 = vrot.slane %v2315_v15, %v4123_v8  ;;  %v2352_v30 = vrot.slane %v2337_v16, %v4123_v8  ;;  %v3053_v32 = vpack.i.b16 %v4136_v5, %v1988_v63 }
 0x319   : > { %v2330_v34 = vrot.slane %v2316_v14, %v4123_v8  ;;  %v2053_v44 = vcombine.low %v4158_v31, %v3045_v59  ;;  %v2068_v49 = vrot.slane %v2054_v4, %v4123_v8  ;;  %v3054_v45 = vpack.i.b16 %v4146_v60, %v4151_v28 }
 0x31a   : > { %v2180_v54 = vcombine.low %v2172_v6, %v2179_v18  ;;  %v2229_v56 = vcombine.low %v3046_v38, %v3053_v32  ;;  %v2251_v58 = vrot.slane %v1998_v52, %v4123_v8  ;;  %v1993_v46 = vunpack.i.l.s16 %v4146_v60 }
 0x31b   : > { %v2338_v55 = vcombine.low %v2323_v9, %v2330_v34  ;;  %v2061_v62 = vrot.slane %v2053_v44, %v4123_v8  ;;  %v2230_v63 = vcombine.low %v3054_v45, %v3055_v17  ;;  %v2100_v24 = vcombine.low %v4128_v0, %v4136_v5 }
 0x31c   : > { %2181 = vrot.lane.b32.xlu0 %v2180_v54, %s3520_s17  ;;  %v2237_v31 = vrot.slane %v2229_v56, %v4123_v8  ;;  %v2266_v28 = vrot.slane %v2251_v58, %v4123_v8  ;;  %v2107_v3 = vrot.slane %v2099_v33, %v4123_v8  ;;  %v2121_v7 = vrot.slane %v1993_v46, %v4123_v8 }
 0x31d   : > { %v2345_v60 = vrot.slane %v2338_v55, %v4123_v8  ;;  %v2076_v48 = vcombine.low %v2061_v62, %v2068_v49  ;;  %v2244_v23 = vrot.slane %v2230_v63, %v4123_v8  ;;  %v2114_v29 = vrot.slane %v2100_v24, %v4123_v8  ;;  %v3496_v55 = vld [vmem:[%s4339_s6 + $0x100] sm:$0xff]   ;;  %v3497_v24 = vld [vmem:[%s4339_s6 + $0x108] sm:$0xff]  }
 0x31e   : > { %v2136_v50 = vrot.slane %v2121_v7, %v4123_v8  ;;  %v1991_v47 = vunpack.i.l.s16 %v4136_v5  ;;  %v2010_v40 = vcombine.low %v4155_v21, %v4132_v41  ;;  %v2001_v27 = vunpack.i.l.s16 %v4204_v61  ;;  %v3060_v7 = vld [vmem:[%s4340_s7] ss:$0 sm:$0xff] }
 0x31f   : > { %v2353_v35 = vcombine.low %v2345_v60, %v2352_v30  ;;  %v2083_v18 = vrot.slane %v2076_v48, %v4123_v8  ;;  %v2252_v33 = vcombine.low %v2237_v31, %v2244_v23  ;;  %v2122_v57 = vcombine.low %v2107_v3, %v2114_v29  ;;  %v3498_v31 = vld [vmem:[%s4339_s6 + $0x110] sm:$0xff]  }
 0x320   : > { %v2024_v1 = vrot.slane %v2010_v40, %v4123_v8  ;;  %v2031_v19 = vrot.slane %v1991_v47, %v4123_v8  ;;  %v2273_v17 = vcombine.low %v4132_v41, %v4186_v10  ;;  %v2274_v38 = vcombine.low %v4161_v42, %v4191_v37 }
 0x321   : > { %2354 = vrot.lane.b32.xlu1 %v2353_v35, %s3520_s17  ;;  %v2091_v12 = vcombine.low %v2083_v18, %v2090_v2  ;;  %v2259_v22 = vrot.slane %v2252_v33, %v4123_v8  ;;  %v2129_v26 = vrot.slane %v2122_v57, %v4123_v8  ;;  %v2295_v16 = vrot.slane %v2001_v27, %v4123_v8 }
 0x322   : > { %v2032_v39 = vcombine.low %v4199_v25, %v2024_v1  ;;  %v2046_v13 = vrot.slane %v2031_v19, %v4123_v8  ;;  %v2281_v15 = vrot.slane %v2273_v17, %v4123_v8  ;;  %v2288_v53 = vrot.slane %v2274_v38, %v4123_v8 }
 0x323   : > { %2092 = vrot.lane.b32.xlu0 %v2091_v12, %s3520_s17  ;;  %v2267_v10 = vcombine.low %v2259_v22, %v2266_v28  ;;  %v2137_v52 = vcombine.low %v2129_v26, %v2136_v50  ;;  %v1997_v14 = vunpack.i.l.s16 %v4170_v36  ;;  %v2310_v37 = vrot.slane %v2295_v16, %v4123_v8  ;;  %v3499_v28 = vld [vmem:[%s4339_s6 + $0x118] sm:$0xff]  }
 0x324   : > { %v2039_v59 = vrot.slane %v2032_v39, %v4123_v8  ;;  %v3052_v25 = vpack.i.b16 %v1990_v20, %v4128_v0  ;;  %v2187_v4 = vcombine.low %v4136_v5, %v4161_v42  ;;  %v2296_v2 = vcombine.low %v2281_v15, %v2288_v53 }
 0x325   : > { %2268 = vrot.lane.b32.xlu1 %v2267_v10, %s3520_s17  ;;  %v2208_v6 = vrot.slane %v1997_v14, %v4123_v8  ;;  %v2361_v9 = vcombine.low %v4170_v36, %v4204_v61  ;;  %v2368_v30 = vrot.slane %v4209_v43, %v4123_v8 }
 0x326   : > { %v2047_v32 = vcombine.low %v2039_v59, %v2046_v13  ;;  %v2186_v34 = vcombine.low %v4155_v21, %v3052_v25  ;;  %v2201_v41 = vrot.slane %v2187_v4, %v4123_v8  ;;  %v2303_v0 = vrot.slane %v2296_v2, %v4123_v8 }
 0x327   : > { %v2223_v5 = vrot.slane %v2208_v6, %v4123_v8  ;;  %v2375_v20 = vrot.slane %v2361_v9, %v4123_v8 }
 0x328   : > { %v2194_v42 = vrot.slane %v2186_v34, %v4123_v8  ;;  %v2311_v44 = vcombine.low %v2303_v0, %v2310_v37 }
 0x329   : > { %v2383_v49 = vcombine.low %v2368_v30, %v2375_v20 }
 0x32a   : > { %v2209_v45 = vcombine.low %v2194_v42, %v2201_v41 }
 0x32b   : > { %v2390_v36 = vrot.slane %v2383_v49, %v4123_v8 }
 0x32c   : > { %v2216_v61 = vrot.slane %v2209_v45, %v4123_v8 }
 0x32d   : > { %v2398_v43 = vcombine.low %v2390_v36, %v4194_v11 }
 0x32e   : > { %v2224_v21 = vcombine.low %v2216_v61, %v2223_v5 }
 0x38e   : > { %v2182_v54 = vpop.permute.xlu0 %2181 }
 0x38f   : > { %v2406_v56 = vsel %vm2399_vm11, %v2137_v52, %v2182_v54 }
 0x390   : > { %2746 = vmatprep.mubr.bf16.mxu0 %v2406_v56 }
 0x393   : > { %v2355_v58 = vpop.permute.xlu1 %2354 }
 0x394   : > { %v2414_v46 = vsel %vm2399_vm11, %v2311_v44, %v2355_v58 }
 0x395   : > { %v2093_v62 = vpop.permute.xlu0 %2092  ;;  %2787 = vmatprep.mubr.bf16.mxu1 %v2414_v46 }
 0x396   : > { %v2402_v63 = vsel %vm2399_vm11, %v2047_v32, %v2093_v62 }
 0x397   : > { %2747 = vmatmul.mubr.bf16.vlgmr.msra.gmra.mrb[28].mxu0 %v2402_v63  ;;  %v2269_v8 = vpop.permute.xlu1 %2268 }
 0x398   : > { %3349 = vmatpush3.bf16.msra.mxu0 %v3496_v55  ;;  %v2410_v11 = vsel %vm2399_vm11, %v2224_v21, %v2269_v8  ;;  %3356 = vmatprep.mubr.msk.bf16.mxu0 %vm3518_vm9, %v3517_v51 }
 0x399   : > { %2788 = vmatmul.mubr.bf16.vlgmr.msra.gmra.mrb[16].mxu1 %v2410_v11  ;;  %3350 = vmatprep.subr.bf16.mxu0 %v3517_v51 }
 0x39c   : > { %3351 = vmatpush3.bf16.msra.mxu0 %v3497_v24 }
 0x39d   : > { %3352 = vmatprep.subr.bf16.mxu0 %v3517_v51 }
 0x3a0   : > { %3353 = vmatpush3.bf16.msra.mxu0 %v3498_v31 }
 0x3a1   : > { %3354 = vmatprep.subr.bf16.mxu0 %v3517_v51 }
 0x3a4   : > { %3355 = vmatpush3.bf16.msra.mxu0 %v3499_v28 }
 0x3a7   : > { %3357 = vmatmul.mubr.msk.bf16.vlgmr.msra.gmra.mrb[32].mxu0 %vm2399_vm11, %v2398_v43 }
 0x46a   : > { %v3259_v3 = vpop.f32.mrb[28].mxu0 }
 0x46b   : > { %v3260_v60 = vpop.f32.mrb[29].mxu0 }
 0x46c   : > { %v3261_v48 = vadd.f32 %v3260_v60, %v3259_v3  ;;  %v3262_v23 = vpop.f32.mrb[30].mxu0  ;;  %v3281_v29 = vpop.f32.mrb[16].mxu1 }
 0x46d   : > { %v3263_v50 = vpop.f32.mrb[31].mxu0  ;;  %v3282_v47 = vpop.f32.mrb[17].mxu1 }
 0x46e   : > { %v2749_v40 = vadd.f32 %v3261_v48, %v3060_v7  ;;  %v3264_v35 = vadd.f32 %v3263_v50, %v3262_v23  ;;  %v3283_v18 = vadd.f32 %v3282_v47, %v3281_v29  ;;  %v3284_v33 = vpop.f32.mrb[18].mxu1 }
 0x46f   : > { %v3285_v57 = vpop.f32.mrb[19].mxu1 }
 0x470   : > { %v2752_v51 = vadd.f32 %v3264_v35, %v3060_v7  ;;  %v3286_v1 = vadd.f32 %v3285_v57, %v3284_v33  ;;  %v2790_v19 = vadd.f32 %v3283_v18, %v2749_v40 }
 0x472   : > { %v2793_v27 = vadd.f32 %v3286_v1, %v2752_v51 }
 0x47a   : > { %v2830_v17 = vpop.f32.mrb[32].mxu0 }
 0x47b   : > { %v2831_v12 = vadd.f32 %v2830_v17, %v2790_v19  ;;  %v3358_v22 = vpop.f32.mrb[33].mxu0 }
 0x47c   : > { %v2833_v26 = vpop.f32.mrb[34].mxu0 }
 0x47d   : > { %v3098_v38 = vmul.f32 -1.442695, %v2831_v12  ;;  %v2834_v39 = vadd.f32 %v2833_v26, %v2793_v27  ;;  %v3359_v13 = vpop.f32.mrb[35].mxu0 }
 0x47f   : > { %3500 = vpow2.f32 %v3098_v38  ;;  %v3099_v15 = vmul.f32 -1.442695, %v2834_v39 }
 0x481   : > { %3502 = vpow2.f32 %v3099_v15 }
 0x489   : > { %v3501_v16 = vpop.eup %3500 }
 0x48a   : > { %v2843_v10 = vadd.f32 1.0, %v3501_v16 }
 0x48b   : > { %v3503_v52 = vpop.eup %3502 }
 0x48c   : > { %3504 = vrcp.f32 %v2843_v10  ;;  %v2844_v53 = vadd.f32 1.0, %v3503_v52 }
 0x48e   : > { %3506 = vrcp.f32 %v2844_v53 }
 0x496   : > { %v3505_v14 = vpop.eup %3504 }
 0x497   : > { %2850 = vst.msk [vmem:[%s305_s11] sm:$0xff] %vm2849_vm12, %v3505_v14 }
 0x498   : > { %v3507_v59 = vpop.eup %3506 }
 0x499   : > { %2852 = vst.msk [vmem:[%s305_s11 + $0x8] sm:$0x1] %vm2851_vm13, %v3507_v59 }
 0x49a PF: > { %s18_s27 = sadd.s32 1, %s3514_s27  }
 0x49b   : > { %p15_p4 = scmp.ge.s32.totalorder %s18_s27, 4  }
 0x49d   :  { %17 = sbr.rel (!%p15_p4) target bundleno = 1 (0x1), region = 82 }

</bundles_post_ra>
